<compile_context>
chip_gen: v5e
topology: v5e:2x2
jax: 0.10.0
libtpu: 0.0.40
codegen_flags: <defaults>
</compile_context>

<pallas_src>
import math
from functools import partial

import jax
import jax.numpy as jnp
from jax import lax
from jax.experimental import pallas as pl
from jax.experimental.pallas import tpu as pltpu

WINDOW = 8
DIMS = [96, 192, 384, 768]
DEPTHS = [2, 2, 6, 2]
NUM_HEADS = [3, 6, 12, 24]
HIDDEN_DIM = 128          # config.HIDDEN_DIM
MLP_RATIO = 4
_INV_SQRT2 = 1.0 / math.sqrt(2.0)
_VMEM_LIMIT = 40 * 1024 * 1024   # safe on v5e/v6e (128 MiB) and v7x (64 MiB) physical VMEM


def _gelu(x):
    # exact GELU (matches torch.nn.GELU default), computed in f32
    return 0.5 * x * (1.0 + lax.erf(x * _INV_SQRT2))


def _layernorm(x, g, b, eps=1e-5):
    mu = jnp.mean(x, axis=-1, keepdims=True)
    xc = x - mu
    var = jnp.mean(xc * xc, axis=-1, keepdims=True)
    return xc * lax.rsqrt(var + eps) * g + b


# ----------------------------- Pallas kernels --------------------------------

def _dense_kernel(x_ref, w_ref, b_ref, o_ref, *, act):
    y = jnp.dot(x_ref[...].astype(jnp.bfloat16), w_ref[...],
                preferred_element_type=jnp.float32) + b_ref[...]
    if act == "gelu":
        y = _gelu(y)
    o_ref[...] = y.astype(o_ref.dtype)


def dense(x, w, b, act=None):
    """y = act(x @ w + b).  x: (M, K) f32, w: (K, N) bf16, b: (N,) f32."""
    M, K = x.shape
    N = w.shape[1]
    # adaptive row tile: keep per-tile VMEM modest while amortizing grid-step overhead
    row_bytes = 4 * (K + N)
    tm = 2048 if row_bytes <= 2048 else (1024 if row_bytes <= 4096 else 512)
    Mp = ((M + 7) // 8) * 8
    if Mp <= tm:
        TM = Mp
    else:
        TM = tm
        Mp = ((M + TM - 1) // TM) * TM
    if Mp != M:
        x = jnp.pad(x, ((0, Mp - M), (0, 0)))
    out = pl.pallas_call(
        partial(_dense_kernel, act=act),
        out_shape=jax.ShapeDtypeStruct((Mp, N), jnp.float32),
        grid=(Mp // TM,),
        in_specs=[
            pl.BlockSpec((TM, K), lambda i: (i, 0)),
            pl.BlockSpec((K, N), lambda i: (0, 0)),
            pl.BlockSpec((1, N), lambda i: (0, 0)),
        ],
        out_specs=pl.BlockSpec((TM, N), lambda i: (i, 0)),
        compiler_params=pltpu.CompilerParams(
            dimension_semantics=("parallel",),
            vmem_limit_bytes=_VMEM_LIMIT),
    )(x, w, b.reshape(1, N))
    return out[:M]


def _mlp_kernel(x_ref, g_ref, b_ref, w1_ref, b1_ref, w2_ref, b2_ref, o_ref):
    x = x_ref[...]
    xn = _layernorm(x, g_ref[...], b_ref[...])
    h = jnp.dot(xn.astype(jnp.bfloat16), w1_ref[...],
                preferred_element_type=jnp.float32) + b1_ref[...]
    h = _gelu(h)
    y = jnp.dot(h.astype(jnp.bfloat16), w2_ref[...],
                preferred_element_type=jnp.float32) + b2_ref[...]
    o_ref[...] = x + y                                  # fused residual add


def mlp_block(x, p):
    """x + fc2(gelu(fc1(LN2(x)))) fused in one pallas_call.  x: (M, C) f32."""
    M, C = x.shape
    Hd = p["fc1_w"].shape[1]
    if C <= 192:
        tm = 1024
    elif C <= 384:
        tm = 512
    else:
        tm = 256                                        # cap VMEM for the 768->3072 MLP
    Mp = ((M + 7) // 8) * 8
    if Mp <= tm:
        TM = Mp
    else:
        TM = tm
        Mp = ((M + TM - 1) // TM) * TM
    if Mp != M:
        x = jnp.pad(x, ((0, Mp - M), (0, 0)))
    out = pl.pallas_call(
        _mlp_kernel,
        out_shape=jax.ShapeDtypeStruct((Mp, C), jnp.float32),
        grid=(Mp // TM,),
        in_specs=[
            pl.BlockSpec((TM, C), lambda i: (i, 0)),
            pl.BlockSpec((1, C), lambda i: (0, 0)),
            pl.BlockSpec((1, C), lambda i: (0, 0)),
            pl.BlockSpec((C, Hd), lambda i: (0, 0)),
            pl.BlockSpec((1, Hd), lambda i: (0, 0)),
            pl.BlockSpec((Hd, C), lambda i: (0, 0)),
            pl.BlockSpec((1, C), lambda i: (0, 0)),
        ],
        out_specs=pl.BlockSpec((TM, C), lambda i: (i, 0)),
        compiler_params=pltpu.CompilerParams(
            dimension_semantics=("parallel",),
            vmem_limit_bytes=_VMEM_LIMIT),
    )(x, p["ln2_g"].reshape(1, C), p["ln2_b"].reshape(1, C),
      p["fc1_w"], p["fc1_b"].reshape(1, Hd),
      p["fc2_w"], p["fc2_b"].reshape(1, C))
    return out[:M]


def _msa_kernel(x_ref, g_ref, b_ref, wq_ref, wk_ref, wv_ref,
                bq_ref, bk_ref, bv_ref, wp_ref, bp_ref, o_ref, *, num_heads):
    Wb, T, C = x_ref.shape
    Dh = C // num_heads
    scale = 1.0 / math.sqrt(Dh)

    x = x_ref[...].reshape(Wb * T, C)
    xn = _layernorm(x, g_ref[...], b_ref[...]).astype(jnp.bfloat16)

    q = jnp.dot(xn, wq_ref[...], preferred_element_type=jnp.float32) + bq_ref[...]
    k = jnp.dot(xn, wk_ref[...], preferred_element_type=jnp.float32) + bk_ref[...]
    v = jnp.dot(xn, wv_ref[...], preferred_element_type=jnp.float32) + bv_ref[...]
    qb = (q * scale).astype(jnp.bfloat16).reshape(Wb, T, C)
    kb = k.astype(jnp.bfloat16).reshape(Wb, T, C)
    vb = v.astype(jnp.bfloat16).reshape(Wb, T, C)

    wp = wp_ref[...]
    y = jnp.zeros((Wb * T, C), jnp.float32)
    for h in range(num_heads):                          # static unroll over heads
        sl = slice(h * Dh, (h + 1) * Dh)
        s = jnp.einsum("wtd,wsd->wts", qb[:, :, sl], kb[:, :, sl],
                       preferred_element_type=jnp.float32)
        m = jnp.max(s, axis=-1, keepdims=True)
        p = jnp.exp(s - m)
        inv = pl.reciprocal(jnp.sum(p, axis=-1, keepdims=True), approx=True)
        p = (p * inv).astype(jnp.bfloat16)
        oh = jnp.einsum("wts,wsd->wtd", p, vb[:, :, sl],
                        preferred_element_type=jnp.float32)
        # accumulate output projection head-by-head: concat_h(oh) @ Wp == sum_h oh @ Wp[h]
        y = y + jnp.dot(oh.reshape(Wb * T, Dh).astype(jnp.bfloat16), wp[sl, :],
                        preferred_element_type=jnp.float32)
    o_ref[...] = (y + bp_ref[...]).reshape(Wb, T, C)


def window_msa(xw, p, num_heads):
    """Fused LN1 + qkv + windowed multi-head attention + output projection.

    xw: (nW, T, C) f32 window-partitioned tokens -> (nW, T, C) f32 (lane-dense output).
    """
    nW, T, C = xw.shape
    if C <= 192:
        target = 32
    elif C <= 384:
        target = 8
    else:
        target = 4
    Wb = min(nW, target)
    while nW % Wb:
        Wb -= 1
    vec_spec = pl.BlockSpec((1, C), lambda i: (0, 0))
    mat_spec = pl.BlockSpec((C, C), lambda i: (0, 0))
    return pl.pallas_call(
        partial(_msa_kernel, num_heads=num_heads),
        out_shape=jax.ShapeDtypeStruct((nW, T, C), jnp.float32),
        grid=(nW // Wb,),
        in_specs=[
            pl.BlockSpec((Wb, T, C), lambda i: (i, 0, 0)),
            vec_spec, vec_spec,                    # ln1 gamma / beta
            mat_spec, mat_spec, mat_spec,          # wq, wk, wv
            vec_spec, vec_spec, vec_spec,          # bq, bk, bv
            mat_spec, vec_spec,                    # proj w, proj b
        ],
        out_specs=pl.BlockSpec((Wb, T, C), lambda i: (i, 0, 0)),
        compiler_params=pltpu.CompilerParams(
            dimension_semantics=("parallel",),
            vmem_limit_bytes=_VMEM_LIMIT),
    )(xw,
      p["ln1_g"].reshape(1, C), p["ln1_b"].reshape(1, C),
      p["wq"], p["wk"], p["wv"],
      p["bq"].reshape(1, C), p["bk"].reshape(1, C), p["bv"].reshape(1, C),
      p["proj_w"], p["proj_b"].reshape(1, C))


# ----------------------------- parameter init --------------------------------

class ParamGen:
    def __init__(self, seed=0):
        self.key = jax.random.PRNGKey(seed)
        self.count = 0

    def normal(self, shape, scale=0.02, dtype=jnp.bfloat16):
        self.count += 1
        k = jax.random.fold_in(self.key, self.count)
        return (scale * jax.random.normal(k, shape, dtype=jnp.float32)).astype(dtype)

    def zeros(self, shape):
        return jnp.zeros(shape, jnp.float32)

    def ones(self, shape):
        return jnp.ones(shape, jnp.float32)


def init_swin_block(pg, dim):
    h = MLP_RATIO * dim
    return dict(
        ln1_g=pg.ones((dim,)), ln1_b=pg.zeros((dim,)),
        wq=pg.normal((dim, dim)), wk=pg.normal((dim, dim)), wv=pg.normal((dim, dim)),
        bq=pg.zeros((dim,)), bk=pg.zeros((dim,)), bv=pg.zeros((dim,)),
        proj_w=pg.normal((dim, dim)), proj_b=pg.zeros((dim,)),
        ln2_g=pg.ones((dim,)), ln2_b=pg.zeros((dim,)),
        fc1_w=pg.normal((dim, h)), fc1_b=pg.zeros((h,)),
        fc2_w=pg.normal((h, dim)), fc2_b=pg.zeros((dim,)),
    )


def init_stage(pg, dim, depth, is_encoder=False, is_decoder=False):
    p = dict(
        time_w=pg.normal((HIDDEN_DIM, dim)), time_b=pg.zeros((dim,)),
        blocks=[init_swin_block(pg, dim) for _ in range(depth)],
    )
    if is_decoder:
        if dim == 384:
            in_dim = 768 + 768
        elif dim == 192:
            in_dim = 192 + 384
        else:
            in_dim = 96 + 192
        # Conv2d(in_dim, dim, 1) stored as a (in_dim, dim) matmul weight
        p["chproj_w"] = pg.normal((in_dim, dim))
        p["chproj_b"] = pg.zeros((dim,))
        out_dim = dim if dim == 96 else dim // 2
        # ConvTranspose2d(dim, out_dim, 2, 2) stored as (dim, 2*2*out_dim), (kh, kw, o) cols
        p["up_w"] = pg.normal((dim, 4 * out_dim))
        p["up_b"] = pg.zeros((out_dim,))
    elif is_encoder and dim != 768:
        # Conv2d(dim, 2*dim, 2, 2) stored as (2*2*dim, 2*dim), (kh, kw, c) rows
        p["down_w"] = pg.normal((4 * dim, 2 * dim))
        p["down_b"] = pg.zeros((2 * dim,))
    return p


def init_model(pg):
    # final Conv2d(96, 3, 1): pad output channels 3 -> 128 for lane-dense stores.
    fw = pg.normal((96, 3), dtype=jnp.float32)
    fw = jnp.pad(fw, ((0, 0), (0, 128 - 3))).astype(jnp.bfloat16)
    return dict(
        patch_w=pg.normal((6, 96)), patch_b=pg.zeros((96,)),           # Conv2d(6, 96, 1)
        tmlp_w=pg.normal((HIDDEN_DIM, HIDDEN_DIM)),
        tmlp_b=pg.zeros((HIDDEN_DIM,)),
        enc=[init_stage(pg, DIMS[i], DEPTHS[i], is_encoder=True) for i in range(4)],
        mid=init_stage(pg, DIMS[3], DEPTHS[3]),
        dec=[init_stage(pg, DIMS[i], DEPTHS[i], is_decoder=True) for i in (2, 1, 0)],
        final_w=fw, final_b=pg.zeros((128,)),
    )


# ----------------------------- forward (JAX glue) -----------------------------

def sinusoidal_emb(t, dim):
    half = dim // 2
    freq = jnp.exp(jnp.arange(half, dtype=jnp.float32) * (-math.log(10000.0) / (half - 1)))
    emb = t[:, None].astype(jnp.float32) * freq[None, :]
    return jnp.concatenate([jnp.sin(emb), jnp.cos(emb)], axis=-1)


def window_partition(x, ws):
    B, H, W, C = x.shape
    x = x.reshape(B, H // ws, ws, W // ws, ws, C).transpose(0, 1, 3, 2, 4, 5)
    return x.reshape(-1, ws * ws, C)


def window_reverse(xw, ws, B, H, W, C):
    x = xw.reshape(B, H // ws, W // ws, ws, ws, C).transpose(0, 1, 3, 2, 4, 5)
    return x.reshape(B, H, W, C)


def swin_block_fwd(x_flat, p, B, H, W, num_heads, shift):
    # TODO(synk): SwinTransformerBlock source was not provided with the module; this is the
    # standard pre-LN windowed-MSA + MLP block with cyclic shift, without relative position
    # bias or the shifted-window attention mask.
    C = x_flat.shape[-1]
    L = H * W
    shortcut = x_flat
    x = x_flat.reshape(B, H, W, C)
    if shift > 0:
        x = jnp.roll(x, shift=(-shift, -shift), axis=(1, 2))
    xw = window_partition(x, WINDOW)                      # (nW, T, C)
    attn = window_msa(xw, p, num_heads)                   # fused LN1+qkv+attn+proj
    x = window_reverse(attn, WINDOW, B, H, W, C)
    if shift > 0:
        x = jnp.roll(x, shift=(shift, shift), axis=(1, 2))
    x = shortcut + x.reshape(B, L, C)
    # fused LN2 + MLP + residual
    y = mlp_block(x.reshape(-1, C), p)
    return y.reshape(B, L, C)


def stage_block_fwd(x, t_emb, p, dim, num_heads, is_encoder=False, is_decoder=False):
    # x: (B, H, W, Cin) in NHWC
    B, H, W, Cin = x.shape
    if is_decoder:
        x = dense(x.reshape(-1, Cin), p["chproj_w"], p["chproj_b"],
                  act="gelu").reshape(B, H, W, dim)
    t = dense(t_emb, p["time_w"], p["time_b"], act="gelu")       # (B, dim)
    x = x + t[:, None, None, :]
    x_flat = x.reshape(B, H * W, dim)
    for i, bp in enumerate(p["blocks"]):
        shift = 0 if i % 2 == 0 else WINDOW // 2
        x_flat = swin_block_fwd(x_flat, bp, B, H, W, num_heads, shift)
    x = x_flat.reshape(B, H, W, dim)
    if is_encoder and dim != 768:
        # Conv2d(dim, 2*dim, kernel=2, stride=2) as a patch-merge matmul
        patches = x.reshape(B, H // 2, 2, W // 2, 2, dim).transpose(0, 1, 3, 2, 4, 5)
        patches = patches.reshape(-1, 4 * dim)
        x = dense(patches, p["down_w"], p["down_b"]).reshape(B, H // 2, W // 2, 2 * dim)
    elif is_decoder:
        out_dim = dim if dim == 96 else dim // 2
        # ConvTranspose2d(dim, out_dim, kernel=2, stride=2) as matmul + pixel-shuffle
        b4 = jnp.tile(p["up_b"], 4)
        y = dense(x.reshape(-1, dim), p["up_w"], b4)             # (B*H*W, 4*out_dim)
        y = y.reshape(B, H, W, 2, 2, out_dim).transpose(0, 1, 3, 2, 4, 5)
        x = y.reshape(B, 2 * H, 2 * W, out_dim)
    return x


def model_forward(params, x_nchw, cond_nchw, t):
    x = jnp.concatenate([x_nchw, cond_nchw], axis=1)             # (B, 6, H, W)
    x = x.transpose(0, 2, 3, 1)                                  # -> NHWC
    B, H, W, _ = x.shape
    x = dense(x.reshape(-1, 6), params["patch_w"], params["patch_b"]).reshape(B, H, W, 96)
    t_emb = sinusoidal_emb(t, HIDDEN_DIM)
    t_emb = dense(t_emb, params["tmlp_w"], params["tmlp_b"], act="gelu")
    skips = []
    for i in range(4):
        x = stage_block_fwd(x, t_emb, params["enc"][i], DIMS[i], NUM_HEADS[i],
                            is_encoder=True)
        if i < 3:
            skips.append(x)
    x = stage_block_fwd(x, t_emb, params["mid"], DIMS[3], NUM_HEADS[3])
    for j, i in enumerate((2, 1, 0)):                            # decoder stages
        skip = skips[2 - j]
        x = jnp.concatenate([x, skip], axis=-1)                  # channel concat (NHWC)
        x = stage_block_fwd(x, t_emb, params["dec"][j], DIMS[i], NUM_HEADS[i],
                            is_decoder=True)
    B2, H2, W2, _ = x.shape
    out = dense(x.reshape(-1, 96), params["final_w"], params["final_b"])   # (M, 128)
    out = out[:, :3].reshape(B2, H2, W2, 3)
    return out.transpose(0, 3, 1, 2)                             # back to NCHW


# ----------------------------------- main -------------------------------------

if __name__ == "__main__":
    # Smallest spatial size compatible with window_size=8 and 3 downsamples is 64.
    B, H, W = 2, 64, 64
    key = jax.random.PRNGKey(0)
    k1, k2, k3 = jax.random.split(key, 3)
    x = jax.random.normal(k1, (B, 3, H, W), dtype=jnp.float32)
    condition = jax.random.normal(k2, (B, 3, H, W), dtype=jnp.float32)
    t = jax.random.uniform(k3, (B,), dtype=jnp.float32, minval=0.0, maxval=1000.0)

    params = init_model(ParamGen(0))
    out = model_forward(params, x, condition, t)
    out = jax.block_until_ready(out)
    assert out.shape == (B, 3, H, W), out.shape
    assert bool(jnp.all(jnp.isfinite(out)))
    print("KERNEL_OK")
</pallas_src>

<mosaic_0001>
module attributes {stable_mosaic.version = 11 : i64} {
  func.func @_dense_kernel(%arg0: i32, %arg1: memref<2048x6xf32, #tpu.memory_space<vmem>>, %arg2: memref<6x96xbf16, #tpu.memory_space<vmem>>, %arg3: memref<1x96xf32, #tpu.memory_space<vmem>>, %arg4: memref<2048x96xf32, #tpu.memory_space<vmem>>) attributes {dimension_semantics = [#tpu.dimension_semantics<parallel>], iteration_bounds = array<i64: 4>, scalar_prefetch = 0 : i64, scratch_operands = 0 : i64, tpu.core_type = #tpu.core_type<tc>, window_params = [{transform_indices = @transform_0, window_bounds = array<i64: 2048, 6>}, {pipeline_mode = #tpu.pipeline_mode<synchronous>, transform_indices = @transform_1, window_bounds = array<i64: 6, 96>}, {pipeline_mode = #tpu.pipeline_mode<synchronous>, transform_indices = @transform_2, window_bounds = array<i64: 1, 96>}, {transform_indices = @transform_3, window_bounds = array<i64: 2048, 96>}]} {
    %c0 = arith.constant 0 : index
    %c0_0 = arith.constant 0 : index
    %0 = vector.load %arg1[%c0, %c0_0] : memref<2048x6xf32, #tpu.memory_space<vmem>>, vector<2048x6xf32>
    %1 = arith.truncf %0 : vector<2048x6xf32> to vector<2048x6xbf16>
    %c0_1 = arith.constant 0 : index
    %c0_2 = arith.constant 0 : index
    %2 = vector.load %arg2[%c0_1, %c0_2] : memref<6x96xbf16, #tpu.memory_space<vmem>>, vector<6x96xbf16>
    %cst = arith.constant dense<0.000000e+00> : vector<2048x96xf32>
    %3 = tpu.matmul %1, %2, %cst {dimension_numbers = #tpu.dot_dimension_numbers<[1], [0], [0], [1], [0, 0, 1, 1], [], []>} : vector<2048x6xbf16>, vector<6x96xbf16>, vector<2048x96xf32> -> vector<2048x96xf32>
    %c0_3 = arith.constant 0 : index
    %c0_4 = arith.constant 0 : index
    %4 = vector.load %arg3[%c0_3, %c0_4] : memref<1x96xf32, #tpu.memory_space<vmem>>, vector<1x96xf32>
    %5 = vector.broadcast %4 : vector<1x96xf32> to vector<2048x96xf32>
    %6 = arith.addf %3, %5 : vector<2048x96xf32>
    %c0_5 = arith.constant 0 : index
    %c0_6 = arith.constant 0 : index
    %7 = vector.load %arg4[%c0_5, %c0_6] : memref<2048x96xf32, #tpu.memory_space<vmem>>, vector<2048x96xf32>
    tpu.vector_store %arg4[%c0_5, %c0_6], %6 {strides = array<i32>} : memref<2048x96xf32, #tpu.memory_space<vmem>>, vector<2048x96xf32>,
    return
  }
  func.func @transform_0(%arg0: i32) -> (i32, i32) {
    %c0_i32 = arith.constant 0 : i32
    %c0_i32_0 = arith.constant 0 : i32
    return %arg0, %c0_i32 : i32, i32
  }
  func.func @transform_1(%arg0: i32) -> (i32, i32) {
    %c0_i32 = arith.constant 0 : i32
    %c0_i32_0 = arith.constant 0 : i32
    %c0_i32_1 = arith.constant 0 : i32
    return %c0_i32, %c0_i32_0 : i32, i32
  }
  func.func @transform_2(%arg0: i32) -> (i32, i32) {
    %c0_i32 = arith.constant 0 : i32
    %c0_i32_0 = arith.constant 0 : i32
    %c0_i32_1 = arith.constant 0 : i32
    return %c0_i32, %c0_i32_0 : i32, i32
  }
  func.func @transform_3(%arg0: i32) -> (i32, i32) {
    %c0_i32 = arith.constant 0 : i32
    %c0_i32_0 = arith.constant 0 : i32
    return %arg0, %c0_i32 : i32, i32
  }
}

</mosaic_0001>

<bundles_post_ra>
// kernel: tpu_custom_call.1
= control target key start
LH: loop header
LB: loop body
LE: loop exit
PB: predicated region body
PF: predicated region fallthrough
CT: control target
= control target key end

     0   :  { %s2096_s12 = smov 0   ;;  %s3294_s0 = inlined_call_operand.vmem [shape: f32[8192,6], index: 0, kind: input, shape index: {}]   ;;  %s3295_s1 = inlined_call_operand.vmem [shape: bf16[6,96], index: 1, kind: input, shape index: {}]   ;;  %s3296_s2 = inlined_call_operand.vmem [shape: f32[1,96], index: 2, kind: input, shape index: {}]   ;;  %s3297_s3 = inlined_call_operand.vmem [shape: f32[8192,96], index: 3, kind: output, shape index: {}]  }
   0x1 LB: > { %s1915_s13 = sadd.s32 4294967295, %s2074_s12   ;;  %p1919_p0 = scmp.ge.s32.totalorder %s2074_s12, 1  ;;  %s2074_s12 = sphi %s2096_s12, %s13_s12  }
   0x2   : > { %p138_p1 = scmp.lt.s32.totalorder %s2074_s12, 5 }
   0x4   : > { %p139_p2 = pnand %p1919_p0, %p138_p1 }
   0x5   : > { %s1920_s16 = sshll.u32 (!%p139_p2), %s1915_s13, 8 }
   0x6   : > { %142 = sbr.rel (%p139_p2) target bundleno = 659 (0x293), region = 32  ;;  %p163_p3 = scmp.lt.s32.totalorder (!%p139_p2), %s1920_s16, 1023 }
   0xb   : > { %v559_v0 = vld [vmem:[%s3295_s1] sm:$0x7]  ;;  %vm949_vm0 = vcmask 1042432   ;;  %s3299_s16 = smov (!%p163_p3, %s1920_s16), 1023  ;;  %vm564_vm1 = vcmask 48128   ;;  %vm1602_vm2 = vcmask 785408  }
   0xc   : > { %v951_v1 = vsel %vm949_vm0, %v559_v0, 0  ;;  %s1921_s17 = sshll.u32 %s3299_s16, 3 }
   0xd   : > { %960 = vmatpush.bf16.msra.mxu0 %v951_v1  ;;  %2054 = vmatpush.bf16.msra.mxu1 %v951_v1  ;;  %s2115_s20 = scalar_lea.vmem %s3294_s0, %s1921_s17  ;;  %s2231_s25 = scalar_lea.vmem %s3297_s3, %s1921_s17 }
   0xe   : > { %2055 = vmatpush.bf16.msra.mxu2 %v951_v1  ;;  %2056 = vmatpush.bf16.msra.mxu3 %v951_v1  ;;  %v175_v2 = vld [vmem:[%s2115_s20] sm:$0xff]  ;;  %v176_v3 = vld [vmem:[%s2115_s20 + $0x8] sm:$0xff]  ;;  %v177_v14 = vld [vmem:[%s2115_s20 + $0x10] sm:$0xff] }
   0xf   : > { %v239_v4 = vld [vmem:[%s2115_s20 + $0x200] sm:$0xff]  ;;  %v431_v5 = vpack.c.bf16 %v176_v3, %v175_v2  ;;  %v240_v6 = vld [vmem:[%s2115_s20 + $0x208] sm:$0xff]  ;;  %v178_v15 = vld [vmem:[%s2115_s20 + $0x18] sm:$0xff] }
  0x10   : > { %v303_v7 = vld [vmem:[%s2115_s20 + $0x400] sm:$0xff]  ;;  %v304_v8 = vld [vmem:[%s2115_s20 + $0x408] sm:$0xff]  ;;  %v463_v9 = vpack.c.bf16 %v240_v6, %v239_v4  ;;  %v241_v16 = vld [vmem:[%s2115_s20 + $0x210] sm:$0xff]  ;;  %v432_v22 = vpack.c.bf16 %v178_v15, %v177_v14 }
  0x11   : > { %v495_v10 = vpack.c.bf16 %v304_v8, %v303_v7  ;;  %v367_v11 = vld [vmem:[%s2115_s20 + $0x600] sm:$0xff]  ;;  %v368_v12 = vld [vmem:[%s2115_s20 + $0x608] sm:$0xff]  ;;  %1924 = vmatmul.msk.bf16.vlgmr.msra.gmra.mxu0 %vm564_vm1, %v431_v5  ;;  %v242_v17 = vld [vmem:[%s2115_s20 + $0x218] sm:$0xff] }
  0x12   : > { %v527_v13 = vpack.c.bf16 %v368_v12, %v367_v11  ;;  %1956 = vmatmul.msk.bf16.vlgmr.msra.gmra.mxu1 %vm564_vm1, %v463_v9  ;;  %v305_v18 = vld [vmem:[%s2115_s20 + $0x410] sm:$0xff]  ;;  %v306_v19 = vld [vmem:[%s2115_s20 + $0x418] sm:$0xff]  ;;  %v464_v23 = vpack.c.bf16 %v242_v17, %v241_v16  ;;  %v179_v26 = vld [vmem:[%s2115_s20 + $0x20] sm:$0xff] }
  0x13   : > { %1988 = vmatmul.msk.bf16.vlgmr.msra.gmra.mxu2 %vm564_vm1, %v495_v10  ;;  %v369_v20 = vld [vmem:[%s2115_s20 + $0x610] sm:$0xff]  ;;  %v370_v21 = vld [vmem:[%s2115_s20 + $0x618] sm:$0xff]  ;;  %v496_v24 = vpack.c.bf16 %v306_v19, %v305_v18  ;;  %v180_v27 = vld [vmem:[%s2115_s20 + $0x28] sm:$0xff] }
  0x14   : > { %2020 = vmatmul.msk.bf16.vlgmr.msra.gmra.mxu3 %vm564_vm1, %v527_v13  ;;  %v528_v25 = vpack.c.bf16 %v370_v21, %v369_v20  ;;  %v243_v28 = vld [vmem:[%s2115_s20 + $0x220] sm:$0xff]  ;;  %v244_v29 = vld [vmem:[%s2115_s20 + $0x228] sm:$0xff]  ;;  %v433_v34 = vpack.c.bf16 %v180_v27, %v179_v26  ;;  %v181_v38 = vld [vmem:[%s2115_s20 + $0x30] sm:$0xff] }
  0x15   : > { %v307_v30 = vld [vmem:[%s2115_s20 + $0x420] sm:$0xff]  ;;  %v308_v31 = vld [vmem:[%s2115_s20 + $0x428] sm:$0xff]  ;;  %v465_v35 = vpack.c.bf16 %v244_v29, %v243_v28  ;;  %v182_v39 = vld [vmem:[%s2115_s20 + $0x38] sm:$0xff] }
  0x16   : > { %v371_v32 = vld [vmem:[%s2115_s20 + $0x620] sm:$0xff]  ;;  %v372_v33 = vld [vmem:[%s2115_s20 + $0x628] sm:$0xff]  ;;  %v497_v36 = vpack.c.bf16 %v308_v31, %v307_v30  ;;  %v245_v40 = vld [vmem:[%s2115_s20 + $0x230] sm:$0xff]  ;;  %v434_v46 = vpack.c.bf16 %v182_v39, %v181_v38 }
  0x17   : > { %v529_v37 = vpack.c.bf16 %v372_v33, %v371_v32  ;;  %v246_v41 = vld [vmem:[%s2115_s20 + $0x238] sm:$0xff]  ;;  %v309_v42 = vld [vmem:[%s2115_s20 + $0x430] sm:$0xff]  ;;  %v183_v50 = vld [vmem:[%s2115_s20 + $0x40] sm:$0xff] }
  0x18   : > { %v310_v43 = vld [vmem:[%s2115_s20 + $0x438] sm:$0xff]  ;;  %v373_v44 = vld [vmem:[%s2115_s20 + $0x630] sm:$0xff]  ;;  %v466_v47 = vpack.c.bf16 %v246_v41, %v245_v40  ;;  %v184_v51 = vld [vmem:[%s2115_s20 + $0x48] sm:$0xff] }
  0x19   : > { %v374_v45 = vld [vmem:[%s2115_s20 + $0x638] sm:$0xff]  ;;  %v498_v48 = vpack.c.bf16 %v310_v43, %v309_v42  ;;  %v247_v52 = vld [vmem:[%s2115_s20 + $0x240] sm:$0xff]  ;;  %v248_v53 = vld [vmem:[%s2115_s20 + $0x248] sm:$0xff]  ;;  %v435_v58 = vpack.c.bf16 %v184_v51, %v183_v50 }
  0x1a   : > { %v530_v49 = vpack.c.bf16 %v374_v45, %v373_v44  ;;  %v311_v54 = vld [vmem:[%s2115_s20 + $0x440] sm:$0xff]  ;;  %v312_v55 = vld [vmem:[%s2115_s20 + $0x448] sm:$0xff]  ;;  %v467_v59 = vpack.c.bf16 %v248_v53, %v247_v52  ;;  %v185_v62 = vld [vmem:[%s2115_s20 + $0x50] sm:$0xff] }
  0x1b   : > { %v375_v56 = vld [vmem:[%s2115_s20 + $0x640] sm:$0xff]  ;;  %v376_v57 = vld [vmem:[%s2115_s20 + $0x648] sm:$0xff]  ;;  %v499_v60 = vpack.c.bf16 %v312_v55, %v311_v54  ;;  %v186_v63 = vld [vmem:[%s2115_s20 + $0x58] sm:$0xff] }
  0x1c   : > { %v531_v61 = vpack.c.bf16 %v376_v57, %v375_v56  ;;  %v249_v0 = vld [vmem:[%s2115_s20 + $0x250] sm:$0xff]  ;;  %v250_v1 = vld [vmem:[%s2115_s20 + $0x258] sm:$0xff]  ;;  %v436_v6 = vpack.c.bf16 %v186_v63, %v185_v62  ;;  %v187_v10 = vld [vmem:[%s2115_s20 + $0x60] sm:$0xff] }
  0x1d   : > { %v313_v2 = vld [vmem:[%s2115_s20 + $0x450] sm:$0xff]  ;;  %v314_v3 = vld [vmem:[%s2115_s20 + $0x458] sm:$0xff]  ;;  %v468_v7 = vpack.c.bf16 %v250_v1, %v249_v0  ;;  %v188_v11 = vld [vmem:[%s2115_s20 + $0x68] sm:$0xff] }
  0x1e   : > { %v377_v4 = vld [vmem:[%s2115_s20 + $0x650] sm:$0xff]  ;;  %v378_v5 = vld [vmem:[%s2115_s20 + $0x658] sm:$0xff]  ;;  %v500_v8 = vpack.c.bf16 %v314_v3, %v313_v2  ;;  %v251_v12 = vld [vmem:[%s2115_s20 + $0x260] sm:$0xff]  ;;  %v437_v18 = vpack.c.bf16 %v188_v11, %v187_v10 }
  0x1f   : > { %v532_v9 = vpack.c.bf16 %v378_v5, %v377_v4  ;;  %v252_v13 = vld [vmem:[%s2115_s20 + $0x268] sm:$0xff]  ;;  %v315_v14 = vld [vmem:[%s2115_s20 + $0x460] sm:$0xff]  ;;  %v317_v26 = vld [vmem:[%s2115_s20 + $0x470] sm:$0xff] }
  0x20   : > { %v316_v15 = vld [vmem:[%s2115_s20 + $0x468] sm:$0xff]  ;;  %v379_v16 = vld [vmem:[%s2115_s20 + $0x660] sm:$0xff]  ;;  %v469_v19 = vpack.c.bf16 %v252_v13, %v251_v12  ;;  %v318_v27 = vld [vmem:[%s2115_s20 + $0x478] sm:$0xff] }
  0x21   : > { %1925 = vmatmul.msk.bf16.gmra.mxu0 %vm564_vm1, %v432_v22  ;;  %v380_v17 = vld [vmem:[%s2115_s20 + $0x668] sm:$0xff]  ;;  %v501_v20 = vpack.c.bf16 %v316_v15, %v315_v14  ;;  %v189_v22 = vld [vmem:[%s2115_s20 + $0x70] sm:$0xff]  ;;  %v382_v29 = vld [vmem:[%s2115_s20 + $0x678] sm:$0xff]  ;;  %v502_v32 = vpack.c.bf16 %v318_v27, %v317_v26 }
  0x22   : > { %1957 = vmatmul.msk.bf16.gmra.mxu1 %vm564_vm1, %v464_v23  ;;  %v533_v21 = vpack.c.bf16 %v380_v17, %v379_v16  ;;  %v190_v23 = vld [vmem:[%s2115_s20 + $0x78] sm:$0xff]  ;;  %v381_v28 = vld [vmem:[%s2115_s20 + $0x670] sm:$0xff]  ;;  %v256_v38 = vld [vmem:[%s2115_s20 + $0x288] sm:$0xff] }
  0x23   : > { %1989 = vmatmul.msk.bf16.gmra.mxu2 %vm564_vm1, %v496_v24  ;;  %v253_v24 = vld [vmem:[%s2115_s20 + $0x270] sm:$0xff]  ;;  %v438_v30 = vpack.c.bf16 %v190_v23, %v189_v22  ;;  %v534_v33 = vpack.c.bf16 %v382_v29, %v381_v28  ;;  %v319_v39 = vld [vmem:[%s2115_s20 + $0x480] sm:$0xff]  ;;  %v320_v40 = vld [vmem:[%s2115_s20 + $0x488] sm:$0xff] }
  0x24   : > { %2021 = vmatmul.msk.bf16.gmra.mxu3 %vm564_vm1, %v528_v25  ;;  %v254_v25 = vld [vmem:[%s2115_s20 + $0x278] sm:$0xff]  ;;  %v383_v41 = vld [vmem:[%s2115_s20 + $0x680] sm:$0xff]  ;;  %v384_v42 = vld [vmem:[%s2115_s20 + $0x688] sm:$0xff] }
  0x25   : > { %v470_v31 = vpack.c.bf16 %v254_v25, %v253_v24  ;;  %v258_v62 = vld [vmem:[%s2115_s20 + $0x298] sm:$0xff]  ;;  %v321_v63 = vld [vmem:[%s2115_s20 + $0x490] sm:$0xff]  ;;  %v195_v23 = vld [vmem:[%s2115_s20 + $0xa0] sm:$0xff] }
  0x26   : > { %v322_v0 = vld [vmem:[%s2115_s20 + $0x498] sm:$0xff]  ;;  %v385_v1 = vld [vmem:[%s2115_s20 + $0x690] sm:$0xff]  ;;  %v196_v24 = vld [vmem:[%s2115_s20 + $0xa8] sm:$0xff] }
  0x27   : > { %v386_v2 = vld [vmem:[%s2115_s20 + $0x698] sm:$0xff]  ;;  %v259_v25 = vld [vmem:[%s2115_s20 + $0x2a0] sm:$0xff]  ;;  %v260_v26 = vld [vmem:[%s2115_s20 + $0x2a8] sm:$0xff] }
  0x28   : > { %v536_v13 = vpack.c.bf16 %v386_v2, %v385_v1  ;;  %v323_v27 = vld [vmem:[%s2115_s20 + $0x4a0] sm:$0xff]  ;;  %v324_v28 = vld [vmem:[%s2115_s20 + $0x4a8] sm:$0xff] }
  0x29   : > { %v387_v29 = vld [vmem:[%s2115_s20 + $0x6a0] sm:$0xff] }
  0x31   : > { %1926 = vmatmul.msk.bf16.gmra.mxu0 %vm564_vm1, %v433_v34  ;;  %v2216_v34 = vld [vmem:[%s3296_s2] ss:$0 sm:$0xff] }
  0x32   : > { %1958 = vmatmul.msk.bf16.gmra.mxu1 %vm564_vm1, %v465_v35  ;;  %v191_v35 = vld [vmem:[%s2115_s20 + $0x80] sm:$0xff] }
  0x33   : > { %1990 = vmatmul.msk.bf16.gmra.mxu2 %vm564_vm1, %v497_v36  ;;  %v192_v36 = vld [vmem:[%s2115_s20 + $0x88] sm:$0xff] }
  0x34   : > { %2022 = vmatmul.msk.bf16.gmra.mxu3 %vm564_vm1, %v529_v37  ;;  %v255_v37 = vld [vmem:[%s2115_s20 + $0x280] sm:$0xff]  ;;  %v439_v43 = vpack.c.bf16 %v192_v36, %v191_v35 }
  0x35   : > { %v471_v45 = vpack.c.bf16 %v256_v38, %v255_v37  ;;  %v473_v37 = vpack.c.bf16 %v260_v26, %v259_v25  ;;  %v505_v38 = vpack.c.bf16 %v324_v28, %v323_v27 }
  0x41   : > { %1927 = vmatmul.msk.bf16.gmra.mxu0 %vm564_vm1, %v434_v46  ;;  %v503_v46 = vpack.c.bf16 %v320_v40, %v319_v39 }
  0x42   : > { %1959 = vmatmul.msk.bf16.gmra.mxu1 %vm564_vm1, %v466_v47 }
  0x43   : > { %1991 = vmatmul.msk.bf16.gmra.mxu2 %vm564_vm1, %v498_v48 }
  0x44   : > { %2023 = vmatmul.msk.bf16.gmra.mxu3 %vm564_vm1, %v530_v49  ;;  %v535_v49 = vpack.c.bf16 %v384_v42, %v383_v41 }
  0x51   : > { %1928 = vmatmul.msk.bf16.gmra.mxu0 %vm564_vm1, %v435_v58 }
  0x52   : > { %1960 = vmatmul.msk.bf16.gmra.mxu1 %vm564_vm1, %v467_v59  ;;  %v193_v59 = vld [vmem:[%s2115_s20 + $0x90] sm:$0xff] }
  0x53   : > { %1992 = vmatmul.msk.bf16.gmra.mxu2 %vm564_vm1, %v499_v60  ;;  %v194_v60 = vld [vmem:[%s2115_s20 + $0x98] sm:$0xff] }
  0x54   : > { %2024 = vmatmul.msk.bf16.gmra.mxu3 %vm564_vm1, %v531_v61  ;;  %v257_v61 = vld [vmem:[%s2115_s20 + $0x290] sm:$0xff]  ;;  %v440_v4 = vpack.c.bf16 %v194_v60, %v193_v59  ;;  %v390_v59 = vld [vmem:[%s2115_s20 + $0x6b8] sm:$0xff] }
  0x61   : > { %1929 = vmatmul.msk.bf16.gmra.mxu0 %vm564_vm1, %v436_v6 }
  0x62   : > { %1961 = vmatmul.msk.bf16.gmra.mxu1 %vm564_vm1, %v468_v7 }
  0x63   : > { %1993 = vmatmul.msk.bf16.gmra.mxu2 %vm564_vm1, %v500_v8  ;;  %v472_v8 = vpack.c.bf16 %v258_v62, %v257_v61 }
  0x64   : > { %2025 = vmatmul.msk.bf16.gmra.mxu3 %vm564_vm1, %v532_v9  ;;  %v504_v9 = vpack.c.bf16 %v322_v0, %v321_v63 }
  0x71   : > { %1930 = vmatmul.msk.bf16.gmra.mxu0 %vm564_vm1, %v437_v18 }
  0x72   : > { %1962 = vmatmul.msk.bf16.gmra.mxu1 %vm564_vm1, %v469_v19 }
  0x73   : > { %1994 = vmatmul.msk.bf16.gmra.mxu2 %vm564_vm1, %v501_v20 }
  0x74   : > { %2026 = vmatmul.msk.bf16.gmra.mxu3 %vm564_vm1, %v533_v21 }
  0x81   : > { %1931 = vmatmul.msk.bf16.gmra.mxu0 %vm564_vm1, %v438_v30  ;;  %v388_v30 = vld [vmem:[%s2115_s20 + $0x6a8] sm:$0xff] }
  0x82   : > { %1963 = vmatmul.msk.bf16.gmra.mxu1 %vm564_vm1, %v470_v31  ;;  %v537_v42 = vpack.c.bf16 %v388_v30, %v387_v29 }
  0x83   : > { %1995 = vmatmul.msk.bf16.gmra.mxu2 %vm564_vm1, %v502_v32  ;;  %v441_v32 = vpack.c.bf16 %v196_v24, %v195_v23  ;;  %v392_v23 = vld [vmem:[%s2115_s20 + $0x6c8] sm:$0xff] }
  0x84   : > { %2027 = vmatmul.msk.bf16.gmra.mxu3 %vm564_vm1, %v534_v33 }
  0x8e   : > { %v962_v44 = vpop.f32.mrf.mxu0 }
  0x8f   : > { %v963_v47 = vadd.f32 %v2216_v34, %v962_v44  ;;  %v1122_v48 = vpop.f32.mrf.mxu1 }
  0x90   : > { %v1123_v50 = vadd.f32 %v2216_v34, %v1122_v48 }
  0x91   : > { %1603 = vst.msk [vmem:[%s2231_s25] sm:$0xff] %vm1602_vm2, %v963_v47  ;;  %1932 = vmatmul.msk.bf16.gmra.mxu0 %vm564_vm1, %v439_v43 }
  0x92   : > { %1667 = vst.msk [vmem:[%s2231_s25 + $0x200] sm:$0xff] %vm1602_vm2, %v1123_v50  ;;  %1964 = vmatmul.msk.bf16.gmra.mxu1 %vm564_vm1, %v471_v45 }
  0x93   : > { %1996 = vmatmul.msk.bf16.gmra.mxu2 %vm564_vm1, %v503_v46 }
  0x94   : > { %2028 = vmatmul.msk.bf16.gmra.mxu3 %vm564_vm1, %v535_v49 }
  0x96   : > { %v1282_v51 = vpop.f32.mrf.mxu2  ;;  %v964_v54 = vpop.f32.mrf.mxu0 }
  0x97   : > { %v1283_v52 = vadd.f32 %v2216_v34, %v1282_v51  ;;  %v1442_v53 = vpop.f32.mrf.mxu3  ;;  %v965_v56 = vadd.f32 %v2216_v34, %v964_v54  ;;  %v1124_v57 = vpop.f32.mrf.mxu1  ;;  %v261_v54 = vld [vmem:[%s2115_s20 + $0x2b0] sm:$0xff] }
  0x98   : > { %v1443_v55 = vadd.f32 %v2216_v34, %v1442_v53  ;;  %v1125_v58 = vadd.f32 %v2216_v34, %v1124_v57  ;;  %v198_v53 = vld [vmem:[%s2115_s20 + $0xb8] sm:$0xff] }
  0x99   : > { %1731 = vst.msk [vmem:[%s2231_s25 + $0x400] sm:$0xff] %vm1602_vm2, %v1283_v52  ;;  %v197_v52 = vld [vmem:[%s2115_s20 + $0xb0] sm:$0xff]  ;;  %v326_v57 = vld [vmem:[%s2115_s20 + $0x4b8] sm:$0xff] }
  0x9a   : > { %1795 = vst.msk [vmem:[%s2231_s25 + $0x600] sm:$0xff] %vm1602_vm2, %v1443_v55  ;;  %v262_v55 = vld [vmem:[%s2115_s20 + $0x2b8] sm:$0xff]  ;;  %v442_v61 = vpack.c.bf16 %v198_v53, %v197_v52 }
  0x9b   : > { %1604 = vst.msk [vmem:[%s2231_s25 + $0x8] sm:$0xff] %vm1602_vm2, %v965_v56  ;;  %v325_v56 = vld [vmem:[%s2115_s20 + $0x4b0] sm:$0xff]  ;;  %v474_v1 = vpack.c.bf16 %v262_v55, %v261_v54  ;;  %v394_v52 = vld [vmem:[%s2115_s20 + $0x6d8] sm:$0xff] }
  0x9c   : > { %1668 = vst.msk [vmem:[%s2231_s25 + $0x208] sm:$0xff] %vm1602_vm2, %v1125_v58  ;;  %v389_v58 = vld [vmem:[%s2115_s20 + $0x6b0] sm:$0xff]  ;;  %v506_v2 = vpack.c.bf16 %v326_v57, %v325_v56 }
  0x9e   : > { %v1284_v3 = vpop.f32.mrf.mxu2  ;;  %v967_v7 = vpop.f32.mrf.mxu0 }
  0x9f   : > { %v1285_v5 = vadd.f32 %v2216_v34, %v1284_v3  ;;  %v1444_v6 = vpop.f32.mrf.mxu3  ;;  %v968_v11 = vadd.f32 %v2216_v34, %v967_v7  ;;  %v1127_v12 = vpop.f32.mrf.mxu1 }
  0xa0   : > { %v1445_v10 = vadd.f32 %v2216_v34, %v1444_v6  ;;  %v1128_v14 = vadd.f32 %v2216_v34, %v1127_v12  ;;  %v538_v6 = vpack.c.bf16 %v390_v59, %v389_v58 }
  0xa1   : > { %1732 = vst.msk [vmem:[%s2231_s25 + $0x408] sm:$0xff] %vm1602_vm2, %v1285_v5  ;;  %1933 = vmatmul.msk.bf16.gmra.mxu0 %vm564_vm1, %v440_v4 }
  0xa2   : > { %1796 = vst.msk [vmem:[%s2231_s25 + $0x608] sm:$0xff] %vm1602_vm2, %v1445_v10  ;;  %1965 = vmatmul.msk.bf16.gmra.mxu1 %vm564_vm1, %v472_v8 }
  0xa3   : > { %1605 = vst.msk [vmem:[%s2231_s25 + $0x10] sm:$0xff] %vm1602_vm2, %v968_v11  ;;  %1997 = vmatmul.msk.bf16.gmra.mxu2 %vm564_vm1, %v504_v9 }
  0xa4   : > { %1669 = vst.msk [vmem:[%s2231_s25 + $0x210] sm:$0xff] %vm1602_vm2, %v1128_v14  ;;  %2029 = vmatmul.msk.bf16.gmra.mxu3 %vm564_vm1, %v536_v13 }
  0xa6   : > { %v1287_v15 = vpop.f32.mrf.mxu2  ;;  %v969_v18 = vpop.f32.mrf.mxu0 }
  0xa7   : > { %v1288_v16 = vadd.f32 %v2216_v34, %v1287_v15  ;;  %v1447_v17 = vpop.f32.mrf.mxu3  ;;  %v970_v20 = vadd.f32 %v2216_v34, %v969_v18  ;;  %v1129_v21 = vpop.f32.mrf.mxu1  ;;  %v263_v18 = vld [vmem:[%s2115_s20 + $0x2c0] sm:$0xff] }
  0xa8   : > { %v1448_v19 = vadd.f32 %v2216_v34, %v1447_v17  ;;  %v1130_v22 = vadd.f32 %v2216_v34, %v1129_v21  ;;  %v200_v17 = vld [vmem:[%s2115_s20 + $0xc8] sm:$0xff] }
  0xa9   : > { %1733 = vst.msk [vmem:[%s2231_s25 + $0x410] sm:$0xff] %vm1602_vm2, %v1288_v16  ;;  %v199_v16 = vld [vmem:[%s2115_s20 + $0xc0] sm:$0xff]  ;;  %v328_v21 = vld [vmem:[%s2115_s20 + $0x4c8] sm:$0xff] }
  0xaa   : > { %1797 = vst.msk [vmem:[%s2231_s25 + $0x610] sm:$0xff] %vm1602_vm2, %v1448_v19  ;;  %v264_v19 = vld [vmem:[%s2115_s20 + $0x2c8] sm:$0xff]  ;;  %v443_v25 = vpack.c.bf16 %v200_v17, %v199_v16 }
  0xab   : > { %1606 = vst.msk [vmem:[%s2231_s25 + $0x18] sm:$0xff] %vm1602_vm2, %v970_v20  ;;  %v327_v20 = vld [vmem:[%s2115_s20 + $0x4c0] sm:$0xff]  ;;  %v475_v29 = vpack.c.bf16 %v264_v19, %v263_v18  ;;  %v396_v16 = vld [vmem:[%s2115_s20 + $0x6e8] sm:$0xff] }
  0xac   : > { %1670 = vst.msk [vmem:[%s2231_s25 + $0x218] sm:$0xff] %vm1602_vm2, %v1130_v22  ;;  %v391_v22 = vld [vmem:[%s2115_s20 + $0x6c0] sm:$0xff]  ;;  %v507_v30 = vpack.c.bf16 %v328_v21, %v327_v20 }
  0xae   : > { %v1289_v31 = vpop.f32.mrf.mxu2  ;;  %v972_v36 = vpop.f32.mrf.mxu0 }
  0xaf   : > { %v1290_v33 = vadd.f32 %v2216_v34, %v1289_v31  ;;  %v1449_v35 = vpop.f32.mrf.mxu3  ;;  %v973_v40 = vadd.f32 %v2216_v34, %v972_v36  ;;  %v1132_v41 = vpop.f32.mrf.mxu1 }
  0xb0   : > { %v1450_v39 = vadd.f32 %v2216_v34, %v1449_v35  ;;  %v1133_v43 = vadd.f32 %v2216_v34, %v1132_v41  ;;  %v539_v35 = vpack.c.bf16 %v392_v23, %v391_v22 }
  0xb1   : > { %1734 = vst.msk [vmem:[%s2231_s25 + $0x418] sm:$0xff] %vm1602_vm2, %v1290_v33  ;;  %1934 = vmatmul.msk.bf16.gmra.mxu0 %vm564_vm1, %v441_v32 }
  0xb2   : > { %1798 = vst.msk [vmem:[%s2231_s25 + $0x618] sm:$0xff] %vm1602_vm2, %v1450_v39  ;;  %1966 = vmatmul.msk.bf16.gmra.mxu1 %vm564_vm1, %v473_v37 }
  0xb3   : > { %1607 = vst.msk [vmem:[%s2231_s25 + $0x20] sm:$0xff] %vm1602_vm2, %v973_v40  ;;  %1998 = vmatmul.msk.bf16.gmra.mxu2 %vm564_vm1, %v505_v38 }
  0xb4   : > { %1671 = vst.msk [vmem:[%s2231_s25 + $0x220] sm:$0xff] %vm1602_vm2, %v1133_v43  ;;  %2030 = vmatmul.msk.bf16.gmra.mxu3 %vm564_vm1, %v537_v42 }
  0xb6   : > { %v1292_v44 = vpop.f32.mrf.mxu2  ;;  %v974_v47 = vpop.f32.mrf.mxu0 }
  0xb7   : > { %v1293_v45 = vadd.f32 %v2216_v34, %v1292_v44  ;;  %v1452_v46 = vpop.f32.mrf.mxu3  ;;  %v975_v49 = vadd.f32 %v2216_v34, %v974_v47  ;;  %v1134_v50 = vpop.f32.mrf.mxu1  ;;  %v265_v47 = vld [vmem:[%s2115_s20 + $0x2d0] sm:$0xff] }
  0xb8   : > { %v1453_v48 = vadd.f32 %v2216_v34, %v1452_v46  ;;  %v1135_v51 = vadd.f32 %v2216_v34, %v1134_v50  ;;  %v202_v46 = vld [vmem:[%s2115_s20 + $0xd8] sm:$0xff] }
  0xb9   : > { %1735 = vst.msk [vmem:[%s2231_s25 + $0x420] sm:$0xff] %vm1602_vm2, %v1293_v45  ;;  %v201_v45 = vld [vmem:[%s2115_s20 + $0xd0] sm:$0xff]  ;;  %v330_v50 = vld [vmem:[%s2115_s20 + $0x4d8] sm:$0xff] }
  0xba   : > { %1799 = vst.msk [vmem:[%s2231_s25 + $0x620] sm:$0xff] %vm1602_vm2, %v1453_v48  ;;  %v266_v48 = vld [vmem:[%s2115_s20 + $0x2d8] sm:$0xff]  ;;  %v444_v54 = vpack.c.bf16 %v202_v46, %v201_v45 }
  0xbb   : > { %1608 = vst.msk [vmem:[%s2231_s25 + $0x28] sm:$0xff] %vm1602_vm2, %v975_v49  ;;  %v329_v49 = vld [vmem:[%s2115_s20 + $0x4d0] sm:$0xff]  ;;  %v476_v58 = vpack.c.bf16 %v266_v48, %v265_v47  ;;  %v398_v45 = vld [vmem:[%s2115_s20 + $0x6f8] sm:$0xff] }
  0xbc   : > { %1672 = vst.msk [vmem:[%s2231_s25 + $0x228] sm:$0xff] %vm1602_vm2, %v1135_v51  ;;  %v393_v51 = vld [vmem:[%s2115_s20 + $0x6d0] sm:$0xff]  ;;  %v508_v59 = vpack.c.bf16 %v330_v50, %v329_v49 }
  0xbe   : > { %v1294_v60 = vpop.f32.mrf.mxu2  ;;  %v977_v0 = vpop.f32.mrf.mxu0 }
  0xbf   : > { %v1295_v62 = vadd.f32 %v2216_v34, %v1294_v60  ;;  %v1454_v63 = vpop.f32.mrf.mxu3  ;;  %v978_v4 = vadd.f32 %v2216_v34, %v977_v0  ;;  %v1137_v5 = vpop.f32.mrf.mxu1 }
  0xc0   : > { %v1455_v3 = vadd.f32 %v2216_v34, %v1454_v63  ;;  %v1138_v7 = vadd.f32 %v2216_v34, %v1137_v5  ;;  %v540_v63 = vpack.c.bf16 %v394_v52, %v393_v51 }
  0xc1   : > { %1736 = vst.msk [vmem:[%s2231_s25 + $0x428] sm:$0xff] %vm1602_vm2, %v1295_v62  ;;  %1935 = vmatmul.msk.bf16.gmra.mxu0 %vm564_vm1, %v442_v61 }
  0xc2   : > { %1800 = vst.msk [vmem:[%s2231_s25 + $0x628] sm:$0xff] %vm1602_vm2, %v1455_v3  ;;  %1967 = vmatmul.msk.bf16.gmra.mxu1 %vm564_vm1, %v474_v1 }
  0xc3   : > { %1609 = vst.msk [vmem:[%s2231_s25 + $0x30] sm:$0xff] %vm1602_vm2, %v978_v4  ;;  %1999 = vmatmul.msk.bf16.gmra.mxu2 %vm564_vm1, %v506_v2 }
  0xc4   : > { %1673 = vst.msk [vmem:[%s2231_s25 + $0x230] sm:$0xff] %vm1602_vm2, %v1138_v7  ;;  %2031 = vmatmul.msk.bf16.gmra.mxu3 %vm564_vm1, %v538_v6 }
  0xc6   : > { %v1297_v8 = vpop.f32.mrf.mxu2  ;;  %v979_v11 = vpop.f32.mrf.mxu0 }
  0xc7   : > { %v1298_v9 = vadd.f32 %v2216_v34, %v1297_v8  ;;  %v1457_v10 = vpop.f32.mrf.mxu3  ;;  %v980_v13 = vadd.f32 %v2216_v34, %v979_v11  ;;  %v1139_v14 = vpop.f32.mrf.mxu1  ;;  %v267_v11 = vld [vmem:[%s2115_s20 + $0x2e0] sm:$0xff] }
  0xc8   : > { %v1458_v12 = vadd.f32 %v2216_v34, %v1457_v10  ;;  %v1140_v15 = vadd.f32 %v2216_v34, %v1139_v14  ;;  %v204_v10 = vld [vmem:[%s2115_s20 + $0xe8] sm:$0xff] }
  0xc9   : > { %1737 = vst.msk [vmem:[%s2231_s25 + $0x430] sm:$0xff] %vm1602_vm2, %v1298_v9  ;;  %v203_v9 = vld [vmem:[%s2115_s20 + $0xe0] sm:$0xff]  ;;  %v332_v14 = vld [vmem:[%s2115_s20 + $0x4e8] sm:$0xff] }
  0xca   : > { %1801 = vst.msk [vmem:[%s2231_s25 + $0x630] sm:$0xff] %vm1602_vm2, %v1458_v12  ;;  %v268_v12 = vld [vmem:[%s2115_s20 + $0x2e8] sm:$0xff]  ;;  %v445_v18 = vpack.c.bf16 %v204_v10, %v203_v9 }
  0xcb   : > { %1610 = vst.msk [vmem:[%s2231_s25 + $0x38] sm:$0xff] %vm1602_vm2, %v980_v13  ;;  %v331_v13 = vld [vmem:[%s2115_s20 + $0x4e0] sm:$0xff]  ;;  %v477_v22 = vpack.c.bf16 %v268_v12, %v267_v11  ;;  %v400_v9 = vld [vmem:[%s2115_s20 + $0x708] sm:$0xff] }
  0xcc   : > { %1674 = vst.msk [vmem:[%s2231_s25 + $0x238] sm:$0xff] %vm1602_vm2, %v1140_v15  ;;  %v395_v15 = vld [vmem:[%s2115_s20 + $0x6e0] sm:$0xff]  ;;  %v509_v23 = vpack.c.bf16 %v332_v14, %v331_v13 }
  0xce   : > { %v1299_v24 = vpop.f32.mrf.mxu2  ;;  %v982_v28 = vpop.f32.mrf.mxu0 }
  0xcf   : > { %v1300_v26 = vadd.f32 %v2216_v34, %v1299_v24  ;;  %v1459_v27 = vpop.f32.mrf.mxu3  ;;  %v983_v32 = vadd.f32 %v2216_v34, %v982_v28  ;;  %v1142_v33 = vpop.f32.mrf.mxu1 }
  0xd0   : > { %v1460_v31 = vadd.f32 %v2216_v34, %v1459_v27  ;;  %v1143_v36 = vadd.f32 %v2216_v34, %v1142_v33  ;;  %v541_v27 = vpack.c.bf16 %v396_v16, %v395_v15 }
  0xd1   : > { %1738 = vst.msk [vmem:[%s2231_s25 + $0x438] sm:$0xff] %vm1602_vm2, %v1300_v26  ;;  %1936 = vmatmul.msk.bf16.gmra.mxu0 %vm564_vm1, %v443_v25 }
  0xd2   : > { %1802 = vst.msk [vmem:[%s2231_s25 + $0x638] sm:$0xff] %vm1602_vm2, %v1460_v31  ;;  %1968 = vmatmul.msk.bf16.gmra.mxu1 %vm564_vm1, %v475_v29 }
  0xd3   : > { %1611 = vst.msk [vmem:[%s2231_s25 + $0x40] sm:$0xff] %vm1602_vm2, %v983_v32  ;;  %2000 = vmatmul.msk.bf16.gmra.mxu2 %vm564_vm1, %v507_v30 }
  0xd4   : > { %1675 = vst.msk [vmem:[%s2231_s25 + $0x240] sm:$0xff] %vm1602_vm2, %v1143_v36  ;;  %2032 = vmatmul.msk.bf16.gmra.mxu3 %vm564_vm1, %v539_v35 }
  0xd6   : > { %v1302_v37 = vpop.f32.mrf.mxu2  ;;  %v984_v40 = vpop.f32.mrf.mxu0 }
  0xd7   : > { %v1303_v38 = vadd.f32 %v2216_v34, %v1302_v37  ;;  %v1462_v39 = vpop.f32.mrf.mxu3  ;;  %v985_v42 = vadd.f32 %v2216_v34, %v984_v40  ;;  %v1144_v43 = vpop.f32.mrf.mxu1  ;;  %v269_v40 = vld [vmem:[%s2115_s20 + $0x2f0] sm:$0xff] }
  0xd8   : > { %v1463_v41 = vadd.f32 %v2216_v34, %v1462_v39  ;;  %v1145_v44 = vadd.f32 %v2216_v34, %v1144_v43  ;;  %v206_v39 = vld [vmem:[%s2115_s20 + $0xf8] sm:$0xff] }
  0xd9   : > { %1739 = vst.msk [vmem:[%s2231_s25 + $0x440] sm:$0xff] %vm1602_vm2, %v1303_v38  ;;  %v205_v38 = vld [vmem:[%s2115_s20 + $0xf0] sm:$0xff]  ;;  %v334_v43 = vld [vmem:[%s2115_s20 + $0x4f8] sm:$0xff] }
  0xda   : > { %1803 = vst.msk [vmem:[%s2231_s25 + $0x640] sm:$0xff] %vm1602_vm2, %v1463_v41  ;;  %v270_v41 = vld [vmem:[%s2115_s20 + $0x2f8] sm:$0xff]  ;;  %v446_v47 = vpack.c.bf16 %v206_v39, %v205_v38 }
  0xdb   : > { %1612 = vst.msk [vmem:[%s2231_s25 + $0x48] sm:$0xff] %vm1602_vm2, %v985_v42  ;;  %v333_v42 = vld [vmem:[%s2115_s20 + $0x4f0] sm:$0xff]  ;;  %v478_v51 = vpack.c.bf16 %v270_v41, %v269_v40  ;;  %v402_v38 = vld [vmem:[%s2115_s20 + $0x718] sm:$0xff] }
  0xdc   : > { %1676 = vst.msk [vmem:[%s2231_s25 + $0x248] sm:$0xff] %vm1602_vm2, %v1145_v44  ;;  %v397_v44 = vld [vmem:[%s2115_s20 + $0x6f0] sm:$0xff]  ;;  %v510_v52 = vpack.c.bf16 %v334_v43, %v333_v42 }
  0xde   : > { %v1304_v53 = vpop.f32.mrf.mxu2  ;;  %v987_v57 = vpop.f32.mrf.mxu0 }
  0xdf   : > { %v1305_v55 = vadd.f32 %v2216_v34, %v1304_v53  ;;  %v1464_v56 = vpop.f32.mrf.mxu3  ;;  %v988_v61 = vadd.f32 %v2216_v34, %v987_v57  ;;  %v1147_v62 = vpop.f32.mrf.mxu1 }
  0xe0   : > { %v1465_v60 = vadd.f32 %v2216_v34, %v1464_v56  ;;  %v1148_v0 = vadd.f32 %v2216_v34, %v1147_v62  ;;  %v542_v56 = vpack.c.bf16 %v398_v45, %v397_v44 }
  0xe1   : > { %1740 = vst.msk [vmem:[%s2231_s25 + $0x448] sm:$0xff] %vm1602_vm2, %v1305_v55  ;;  %1937 = vmatmul.msk.bf16.gmra.mxu0 %vm564_vm1, %v444_v54 }
  0xe2   : > { %1804 = vst.msk [vmem:[%s2231_s25 + $0x648] sm:$0xff] %vm1602_vm2, %v1465_v60  ;;  %1969 = vmatmul.msk.bf16.gmra.mxu1 %vm564_vm1, %v476_v58 }
  0xe3   : > { %1613 = vst.msk [vmem:[%s2231_s25 + $0x50] sm:$0xff] %vm1602_vm2, %v988_v61  ;;  %2001 = vmatmul.msk.bf16.gmra.mxu2 %vm564_vm1, %v508_v59 }
  0xe4   : > { %1677 = vst.msk [vmem:[%s2231_s25 + $0x250] sm:$0xff] %vm1602_vm2, %v1148_v0  ;;  %2033 = vmatmul.msk.bf16.gmra.mxu3 %vm564_vm1, %v540_v63 }
  0xe6   : > { %v1307_v1 = vpop.f32.mrf.mxu2  ;;  %v989_v4 = vpop.f32.mrf.mxu0 }
  0xe7   : > { %v1308_v2 = vadd.f32 %v2216_v34, %v1307_v1  ;;  %v1467_v3 = vpop.f32.mrf.mxu3  ;;  %v990_v6 = vadd.f32 %v2216_v34, %v989_v4  ;;  %v1149_v7 = vpop.f32.mrf.mxu1  ;;  %v271_v4 = vld [vmem:[%s2115_s20 + $0x300] sm:$0xff] }
  0xe8   : > { %v1468_v5 = vadd.f32 %v2216_v34, %v1467_v3  ;;  %v1150_v8 = vadd.f32 %v2216_v34, %v1149_v7  ;;  %v208_v3 = vld [vmem:[%s2115_s20 + $0x108] sm:$0xff] }
  0xe9   : > { %1741 = vst.msk [vmem:[%s2231_s25 + $0x450] sm:$0xff] %vm1602_vm2, %v1308_v2  ;;  %v207_v2 = vld [vmem:[%s2115_s20 + $0x100] sm:$0xff]  ;;  %v336_v7 = vld [vmem:[%s2115_s20 + $0x508] sm:$0xff] }
  0xea   : > { %1805 = vst.msk [vmem:[%s2231_s25 + $0x650] sm:$0xff] %vm1602_vm2, %v1468_v5  ;;  %v272_v5 = vld [vmem:[%s2115_s20 + $0x308] sm:$0xff]  ;;  %v447_v11 = vpack.c.bf16 %v208_v3, %v207_v2 }
  0xeb   : > { %1614 = vst.msk [vmem:[%s2231_s25 + $0x58] sm:$0xff] %vm1602_vm2, %v990_v6  ;;  %v335_v6 = vld [vmem:[%s2115_s20 + $0x500] sm:$0xff]  ;;  %v479_v15 = vpack.c.bf16 %v272_v5, %v271_v4  ;;  %v404_v2 = vld [vmem:[%s2115_s20 + $0x728] sm:$0xff] }
  0xec   : > { %1678 = vst.msk [vmem:[%s2231_s25 + $0x258] sm:$0xff] %vm1602_vm2, %v1150_v8  ;;  %v399_v8 = vld [vmem:[%s2115_s20 + $0x700] sm:$0xff]  ;;  %v511_v16 = vpack.c.bf16 %v336_v7, %v335_v6 }
  0xee   : > { %v1309_v17 = vpop.f32.mrf.mxu2  ;;  %v992_v21 = vpop.f32.mrf.mxu0 }
  0xef   : > { %v1310_v19 = vadd.f32 %v2216_v34, %v1309_v17  ;;  %v1469_v20 = vpop.f32.mrf.mxu3  ;;  %v993_v25 = vadd.f32 %v2216_v34, %v992_v21  ;;  %v1152_v26 = vpop.f32.mrf.mxu1 }
  0xf0   : > { %v1470_v24 = vadd.f32 %v2216_v34, %v1469_v20  ;;  %v1153_v28 = vadd.f32 %v2216_v34, %v1152_v26  ;;  %v543_v20 = vpack.c.bf16 %v400_v9, %v399_v8 }
  0xf1   : > { %1742 = vst.msk [vmem:[%s2231_s25 + $0x458] sm:$0xff] %vm1602_vm2, %v1310_v19  ;;  %1938 = vmatmul.msk.bf16.gmra.mxu0 %vm564_vm1, %v445_v18 }
  0xf2   : > { %1806 = vst.msk [vmem:[%s2231_s25 + $0x658] sm:$0xff] %vm1602_vm2, %v1470_v24  ;;  %1970 = vmatmul.msk.bf16.gmra.mxu1 %vm564_vm1, %v477_v22 }
  0xf3   : > { %1615 = vst.msk [vmem:[%s2231_s25 + $0x60] sm:$0xff] %vm1602_vm2, %v993_v25  ;;  %2002 = vmatmul.msk.bf16.gmra.mxu2 %vm564_vm1, %v509_v23 }
  0xf4   : > { %1679 = vst.msk [vmem:[%s2231_s25 + $0x260] sm:$0xff] %vm1602_vm2, %v1153_v28  ;;  %2034 = vmatmul.msk.bf16.gmra.mxu3 %vm564_vm1, %v541_v27 }
  0xf6   : > { %v1312_v29 = vpop.f32.mrf.mxu2  ;;  %v994_v32 = vpop.f32.mrf.mxu0 }
  0xf7   : > { %v1313_v30 = vadd.f32 %v2216_v34, %v1312_v29  ;;  %v1472_v31 = vpop.f32.mrf.mxu3  ;;  %v995_v35 = vadd.f32 %v2216_v34, %v994_v32  ;;  %v1154_v36 = vpop.f32.mrf.mxu1  ;;  %v273_v32 = vld [vmem:[%s2115_s20 + $0x310] sm:$0xff] }
  0xf8   : > { %v1473_v33 = vadd.f32 %v2216_v34, %v1472_v31  ;;  %v1155_v37 = vadd.f32 %v2216_v34, %v1154_v36  ;;  %v210_v31 = vld [vmem:[%s2115_s20 + $0x118] sm:$0xff] }
  0xf9   : > { %1743 = vst.msk [vmem:[%s2231_s25 + $0x460] sm:$0xff] %vm1602_vm2, %v1313_v30  ;;  %v209_v30 = vld [vmem:[%s2115_s20 + $0x110] sm:$0xff]  ;;  %v338_v36 = vld [vmem:[%s2115_s20 + $0x518] sm:$0xff] }
  0xfa   : > { %1807 = vst.msk [vmem:[%s2231_s25 + $0x660] sm:$0xff] %vm1602_vm2, %v1473_v33  ;;  %v274_v33 = vld [vmem:[%s2115_s20 + $0x318] sm:$0xff]  ;;  %v448_v40 = vpack.c.bf16 %v210_v31, %v209_v30 }
  0xfb   : > { %1616 = vst.msk [vmem:[%s2231_s25 + $0x68] sm:$0xff] %vm1602_vm2, %v995_v35  ;;  %v337_v35 = vld [vmem:[%s2115_s20 + $0x510] sm:$0xff]  ;;  %v480_v44 = vpack.c.bf16 %v274_v33, %v273_v32  ;;  %v406_v30 = vld [vmem:[%s2115_s20 + $0x738] sm:$0xff] }
  0xfc   : > { %1680 = vst.msk [vmem:[%s2231_s25 + $0x268] sm:$0xff] %vm1602_vm2, %v1155_v37  ;;  %v401_v37 = vld [vmem:[%s2115_s20 + $0x710] sm:$0xff]  ;;  %v512_v45 = vpack.c.bf16 %v338_v36, %v337_v35 }
  0xfe   : > { %v1314_v46 = vpop.f32.mrf.mxu2  ;;  %v997_v50 = vpop.f32.mrf.mxu0 }
  0xff   : > { %v1315_v48 = vadd.f32 %v2216_v34, %v1314_v46  ;;  %v1474_v49 = vpop.f32.mrf.mxu3  ;;  %v998_v54 = vadd.f32 %v2216_v34, %v997_v50  ;;  %v1157_v55 = vpop.f32.mrf.mxu1 }
 0x100   : > { %v1475_v53 = vadd.f32 %v2216_v34, %v1474_v49  ;;  %v1158_v57 = vadd.f32 %v2216_v34, %v1157_v55  ;;  %v544_v49 = vpack.c.bf16 %v402_v38, %v401_v37 }
 0x101   : > { %1744 = vst.msk [vmem:[%s2231_s25 + $0x468] sm:$0xff] %vm1602_vm2, %v1315_v48  ;;  %1939 = vmatmul.msk.bf16.gmra.mxu0 %vm564_vm1, %v446_v47 }
 0x102   : > { %1808 = vst.msk [vmem:[%s2231_s25 + $0x668] sm:$0xff] %vm1602_vm2, %v1475_v53  ;;  %1971 = vmatmul.msk.bf16.gmra.mxu1 %vm564_vm1, %v478_v51 }
 0x103   : > { %1617 = vst.msk [vmem:[%s2231_s25 + $0x70] sm:$0xff] %vm1602_vm2, %v998_v54  ;;  %2003 = vmatmul.msk.bf16.gmra.mxu2 %vm564_vm1, %v510_v52 }
 0x104   : > { %1681 = vst.msk [vmem:[%s2231_s25 + $0x270] sm:$0xff] %vm1602_vm2, %v1158_v57  ;;  %2035 = vmatmul.msk.bf16.gmra.mxu3 %vm564_vm1, %v542_v56 }
 0x106   : > { %v1317_v58 = vpop.f32.mrf.mxu2  ;;  %v999_v61 = vpop.f32.mrf.mxu0 }
 0x107   : > { %v1318_v59 = vadd.f32 %v2216_v34, %v1317_v58  ;;  %v1477_v60 = vpop.f32.mrf.mxu3  ;;  %v1000_v63 = vadd.f32 %v2216_v34, %v999_v61  ;;  %v1159_v0 = vpop.f32.mrf.mxu1  ;;  %v275_v61 = vld [vmem:[%s2115_s20 + $0x320] sm:$0xff] }
 0x108   : > { %v1478_v62 = vadd.f32 %v2216_v34, %v1477_v60  ;;  %v1160_v1 = vadd.f32 %v2216_v34, %v1159_v0  ;;  %v212_v60 = vld [vmem:[%s2115_s20 + $0x128] sm:$0xff] }
 0x109   : > { %1745 = vst.msk [vmem:[%s2231_s25 + $0x470] sm:$0xff] %vm1602_vm2, %v1318_v59  ;;  %v211_v59 = vld [vmem:[%s2115_s20 + $0x120] sm:$0xff]  ;;  %v340_v0 = vld [vmem:[%s2115_s20 + $0x528] sm:$0xff] }
 0x10a   : > { %1809 = vst.msk [vmem:[%s2231_s25 + $0x670] sm:$0xff] %vm1602_vm2, %v1478_v62  ;;  %v276_v62 = vld [vmem:[%s2115_s20 + $0x328] sm:$0xff]  ;;  %v449_v4 = vpack.c.bf16 %v212_v60, %v211_v59 }
 0x10b   : > { %1618 = vst.msk [vmem:[%s2231_s25 + $0x78] sm:$0xff] %vm1602_vm2, %v1000_v63  ;;  %v339_v63 = vld [vmem:[%s2115_s20 + $0x520] sm:$0xff]  ;;  %v481_v8 = vpack.c.bf16 %v276_v62, %v275_v61  ;;  %v408_v59 = vld [vmem:[%s2115_s20 + $0x748] sm:$0xff] }
 0x10c   : > { %1682 = vst.msk [vmem:[%s2231_s25 + $0x278] sm:$0xff] %vm1602_vm2, %v1160_v1  ;;  %v403_v1 = vld [vmem:[%s2115_s20 + $0x720] sm:$0xff]  ;;  %v513_v9 = vpack.c.bf16 %v340_v0, %v339_v63 }
 0x10e   : > { %v1319_v10 = vpop.f32.mrf.mxu2  ;;  %v1002_v14 = vpop.f32.mrf.mxu0 }
 0x10f   : > { %v1320_v12 = vadd.f32 %v2216_v34, %v1319_v10  ;;  %v1479_v13 = vpop.f32.mrf.mxu3  ;;  %v1003_v18 = vadd.f32 %v2216_v34, %v1002_v14  ;;  %v1162_v19 = vpop.f32.mrf.mxu1 }
 0x110   : > { %v1480_v17 = vadd.f32 %v2216_v34, %v1479_v13  ;;  %v1163_v21 = vadd.f32 %v2216_v34, %v1162_v19  ;;  %v545_v13 = vpack.c.bf16 %v404_v2, %v403_v1 }
 0x111   : > { %1746 = vst.msk [vmem:[%s2231_s25 + $0x478] sm:$0xff] %vm1602_vm2, %v1320_v12  ;;  %1940 = vmatmul.msk.bf16.gmra.mxu0 %vm564_vm1, %v447_v11 }
 0x112   : > { %1810 = vst.msk [vmem:[%s2231_s25 + $0x678] sm:$0xff] %vm1602_vm2, %v1480_v17  ;;  %1972 = vmatmul.msk.bf16.gmra.mxu1 %vm564_vm1, %v479_v15 }
 0x113   : > { %1619 = vst.msk [vmem:[%s2231_s25 + $0x80] sm:$0xff] %vm1602_vm2, %v1003_v18  ;;  %2004 = vmatmul.msk.bf16.gmra.mxu2 %vm564_vm1, %v511_v16 }
 0x114   : > { %1683 = vst.msk [vmem:[%s2231_s25 + $0x280] sm:$0xff] %vm1602_vm2, %v1163_v21  ;;  %2036 = vmatmul.msk.bf16.gmra.mxu3 %vm564_vm1, %v543_v20 }
 0x116   : > { %v1322_v22 = vpop.f32.mrf.mxu2  ;;  %v1004_v25 = vpop.f32.mrf.mxu0 }
 0x117   : > { %v1323_v23 = vadd.f32 %v2216_v34, %v1322_v22  ;;  %v1482_v24 = vpop.f32.mrf.mxu3  ;;  %v1005_v27 = vadd.f32 %v2216_v34, %v1004_v25  ;;  %v1164_v28 = vpop.f32.mrf.mxu1  ;;  %v277_v25 = vld [vmem:[%s2115_s20 + $0x330] sm:$0xff] }
 0x118   : > { %v1483_v26 = vadd.f32 %v2216_v34, %v1482_v24  ;;  %v1165_v29 = vadd.f32 %v2216_v34, %v1164_v28  ;;  %v214_v24 = vld [vmem:[%s2115_s20 + $0x138] sm:$0xff] }
 0x119   : > { %1747 = vst.msk [vmem:[%s2231_s25 + $0x480] sm:$0xff] %vm1602_vm2, %v1323_v23  ;;  %v213_v23 = vld [vmem:[%s2115_s20 + $0x130] sm:$0xff]  ;;  %v342_v28 = vld [vmem:[%s2115_s20 + $0x538] sm:$0xff] }
 0x11a   : > { %1811 = vst.msk [vmem:[%s2231_s25 + $0x680] sm:$0xff] %vm1602_vm2, %v1483_v26  ;;  %v278_v26 = vld [vmem:[%s2115_s20 + $0x338] sm:$0xff]  ;;  %v450_v32 = vpack.c.bf16 %v214_v24, %v213_v23 }
 0x11b   : > { %1620 = vst.msk [vmem:[%s2231_s25 + $0x88] sm:$0xff] %vm1602_vm2, %v1005_v27  ;;  %v341_v27 = vld [vmem:[%s2115_s20 + $0x530] sm:$0xff]  ;;  %v482_v37 = vpack.c.bf16 %v278_v26, %v277_v25  ;;  %v410_v23 = vld [vmem:[%s2115_s20 + $0x758] sm:$0xff] }
 0x11c   : > { %1684 = vst.msk [vmem:[%s2231_s25 + $0x288] sm:$0xff] %vm1602_vm2, %v1165_v29  ;;  %v405_v29 = vld [vmem:[%s2115_s20 + $0x730] sm:$0xff]  ;;  %v514_v38 = vpack.c.bf16 %v342_v28, %v341_v27 }
 0x11e   : > { %v1324_v39 = vpop.f32.mrf.mxu2  ;;  %v1007_v43 = vpop.f32.mrf.mxu0 }
 0x11f   : > { %v1325_v41 = vadd.f32 %v2216_v34, %v1324_v39  ;;  %v1484_v42 = vpop.f32.mrf.mxu3  ;;  %v1008_v47 = vadd.f32 %v2216_v34, %v1007_v43  ;;  %v1167_v48 = vpop.f32.mrf.mxu1 }
 0x120   : > { %v1485_v46 = vadd.f32 %v2216_v34, %v1484_v42  ;;  %v1168_v50 = vadd.f32 %v2216_v34, %v1167_v48  ;;  %v546_v42 = vpack.c.bf16 %v406_v30, %v405_v29 }
 0x121   : > { %1748 = vst.msk [vmem:[%s2231_s25 + $0x488] sm:$0xff] %vm1602_vm2, %v1325_v41  ;;  %1941 = vmatmul.msk.bf16.gmra.mxu0 %vm564_vm1, %v448_v40 }
 0x122   : > { %1812 = vst.msk [vmem:[%s2231_s25 + $0x688] sm:$0xff] %vm1602_vm2, %v1485_v46  ;;  %1973 = vmatmul.msk.bf16.gmra.mxu1 %vm564_vm1, %v480_v44 }
 0x123   : > { %1621 = vst.msk [vmem:[%s2231_s25 + $0x90] sm:$0xff] %vm1602_vm2, %v1008_v47  ;;  %2005 = vmatmul.msk.bf16.gmra.mxu2 %vm564_vm1, %v512_v45 }
 0x124   : > { %1685 = vst.msk [vmem:[%s2231_s25 + $0x290] sm:$0xff] %vm1602_vm2, %v1168_v50  ;;  %2037 = vmatmul.msk.bf16.gmra.mxu3 %vm564_vm1, %v544_v49 }
 0x126   : > { %v1327_v51 = vpop.f32.mrf.mxu2  ;;  %v1009_v54 = vpop.f32.mrf.mxu0 }
 0x127   : > { %v1328_v52 = vadd.f32 %v2216_v34, %v1327_v51  ;;  %v1487_v53 = vpop.f32.mrf.mxu3  ;;  %v1010_v56 = vadd.f32 %v2216_v34, %v1009_v54  ;;  %v1169_v57 = vpop.f32.mrf.mxu1  ;;  %v279_v54 = vld [vmem:[%s2115_s20 + $0x340] sm:$0xff] }
 0x128   : > { %v1488_v55 = vadd.f32 %v2216_v34, %v1487_v53  ;;  %v1170_v58 = vadd.f32 %v2216_v34, %v1169_v57  ;;  %v216_v53 = vld [vmem:[%s2115_s20 + $0x148] sm:$0xff] }
 0x129   : > { %1749 = vst.msk [vmem:[%s2231_s25 + $0x490] sm:$0xff] %vm1602_vm2, %v1328_v52  ;;  %v215_v52 = vld [vmem:[%s2115_s20 + $0x140] sm:$0xff]  ;;  %v344_v57 = vld [vmem:[%s2115_s20 + $0x548] sm:$0xff] }
 0x12a   : > { %1813 = vst.msk [vmem:[%s2231_s25 + $0x690] sm:$0xff] %vm1602_vm2, %v1488_v55  ;;  %v280_v55 = vld [vmem:[%s2115_s20 + $0x348] sm:$0xff]  ;;  %v451_v61 = vpack.c.bf16 %v216_v53, %v215_v52 }
 0x12b   : > { %1622 = vst.msk [vmem:[%s2231_s25 + $0x98] sm:$0xff] %vm1602_vm2, %v1010_v56  ;;  %v343_v56 = vld [vmem:[%s2115_s20 + $0x540] sm:$0xff]  ;;  %v483_v1 = vpack.c.bf16 %v280_v55, %v279_v54  ;;  %v412_v52 = vld [vmem:[%s2115_s20 + $0x768] sm:$0xff] }
 0x12c   : > { %1686 = vst.msk [vmem:[%s2231_s25 + $0x298] sm:$0xff] %vm1602_vm2, %v1170_v58  ;;  %v407_v58 = vld [vmem:[%s2115_s20 + $0x740] sm:$0xff]  ;;  %v515_v2 = vpack.c.bf16 %v344_v57, %v343_v56 }
 0x12e   : > { %v1329_v3 = vpop.f32.mrf.mxu2  ;;  %v1012_v7 = vpop.f32.mrf.mxu0 }
 0x12f   : > { %v1330_v5 = vadd.f32 %v2216_v34, %v1329_v3  ;;  %v1489_v6 = vpop.f32.mrf.mxu3  ;;  %v1013_v11 = vadd.f32 %v2216_v34, %v1012_v7  ;;  %v1172_v12 = vpop.f32.mrf.mxu1 }
 0x130   : > { %v1490_v10 = vadd.f32 %v2216_v34, %v1489_v6  ;;  %v1173_v14 = vadd.f32 %v2216_v34, %v1172_v12  ;;  %v547_v6 = vpack.c.bf16 %v408_v59, %v407_v58 }
 0x131   : > { %1750 = vst.msk [vmem:[%s2231_s25 + $0x498] sm:$0xff] %vm1602_vm2, %v1330_v5  ;;  %1942 = vmatmul.msk.bf16.gmra.mxu0 %vm564_vm1, %v449_v4 }
 0x132   : > { %1814 = vst.msk [vmem:[%s2231_s25 + $0x698] sm:$0xff] %vm1602_vm2, %v1490_v10  ;;  %1974 = vmatmul.msk.bf16.gmra.mxu1 %vm564_vm1, %v481_v8 }
 0x133   : > { %1623 = vst.msk [vmem:[%s2231_s25 + $0xa0] sm:$0xff] %vm1602_vm2, %v1013_v11  ;;  %2006 = vmatmul.msk.bf16.gmra.mxu2 %vm564_vm1, %v513_v9 }
 0x134   : > { %1687 = vst.msk [vmem:[%s2231_s25 + $0x2a0] sm:$0xff] %vm1602_vm2, %v1173_v14  ;;  %2038 = vmatmul.msk.bf16.gmra.mxu3 %vm564_vm1, %v545_v13 }
 0x136   : > { %v1332_v15 = vpop.f32.mrf.mxu2  ;;  %v1014_v18 = vpop.f32.mrf.mxu0 }
 0x137   : > { %v1333_v16 = vadd.f32 %v2216_v34, %v1332_v15  ;;  %v1492_v17 = vpop.f32.mrf.mxu3  ;;  %v1015_v20 = vadd.f32 %v2216_v34, %v1014_v18  ;;  %v1174_v21 = vpop.f32.mrf.mxu1  ;;  %v2683_v15 = vld [vmem:[%s3296_s2] ss:$0 sm:$0xff]  ;;  %v218_v18 = vld [vmem:[%s2115_s20 + $0x158] sm:$0xff] }
 0x138   : > { %v1493_v19 = vadd.f32 %v2216_v34, %v1492_v17  ;;  %v1175_v22 = vadd.f32 %v2216_v34, %v1174_v21  ;;  %v217_v17 = vld [vmem:[%s2115_s20 + $0x150] sm:$0xff]  ;;  %v346_v21 = vld [vmem:[%s2115_s20 + $0x558] sm:$0xff] }
 0x139   : > { %1751 = vst.msk [vmem:[%s2231_s25 + $0x4a0] sm:$0xff] %vm1602_vm2, %v1333_v16  ;;  %v452_v25 = vpack.c.bf16 %v218_v18, %v217_v17  ;;  %v414_v17 = vld [vmem:[%s2115_s20 + $0x778] sm:$0xff] }
 0x13a   : > { %1815 = vst.msk [vmem:[%s2231_s25 + $0x6a0] sm:$0xff] %vm1602_vm2, %v1493_v19  ;;  %v281_v19 = vld [vmem:[%s2115_s20 + $0x350] sm:$0xff] }
 0x13b   : > { %1624 = vst.msk [vmem:[%s2231_s25 + $0xa8] sm:$0xff] %vm1602_vm2, %v1015_v20  ;;  %v345_v20 = vld [vmem:[%s2115_s20 + $0x550] sm:$0xff] }
 0x13c   : > { %1688 = vst.msk [vmem:[%s2231_s25 + $0x2a8] sm:$0xff] %vm1602_vm2, %v1175_v22  ;;  %v409_v22 = vld [vmem:[%s2115_s20 + $0x750] sm:$0xff]  ;;  %v516_v30 = vpack.c.bf16 %v346_v21, %v345_v20 }
 0x13e   : > { %v1334_v31 = vpop.f32.mrf.mxu2  ;;  %v1017_v36 = vpop.f32.mrf.mxu0 }
 0x13f   : > { %v1335_v33 = vadd.f32 %v2216_v34, %v1334_v31  ;;  %v1494_v35 = vpop.f32.mrf.mxu3  ;;  %v1018_v40 = vadd.f32 %v2216_v34, %v1017_v36  ;;  %v1177_v41 = vpop.f32.mrf.mxu1 }
 0x140   : > { %v1495_v39 = vadd.f32 %v2216_v34, %v1494_v35  ;;  %v1178_v43 = vadd.f32 %v2216_v34, %v1177_v41  ;;  %v548_v35 = vpack.c.bf16 %v410_v23, %v409_v22 }
 0x141   : > { %1752 = vst.msk [vmem:[%s2231_s25 + $0x4a8] sm:$0xff] %vm1602_vm2, %v1335_v33  ;;  %1943 = vmatmul.msk.bf16.gmra.mxu0 %vm564_vm1, %v450_v32 }
 0x142   : > { %1816 = vst.msk [vmem:[%s2231_s25 + $0x6a8] sm:$0xff] %vm1602_vm2, %v1495_v39  ;;  %1975 = vmatmul.msk.bf16.gmra.mxu1 %vm564_vm1, %v482_v37 }
 0x143   : > { %1625 = vst.msk [vmem:[%s2231_s25 + $0xb0] sm:$0xff] %vm1602_vm2, %v1018_v40  ;;  %2007 = vmatmul.msk.bf16.gmra.mxu2 %vm564_vm1, %v514_v38 }
 0x144   : > { %1689 = vst.msk [vmem:[%s2231_s25 + $0x2b0] sm:$0xff] %vm1602_vm2, %v1178_v43  ;;  %2039 = vmatmul.msk.bf16.gmra.mxu3 %vm564_vm1, %v546_v42 }
 0x146   : > { %v1337_v44 = vpop.f32.mrf.mxu2  ;;  %v1019_v47 = vpop.f32.mrf.mxu0 }
 0x147   : > { %v1338_v45 = vadd.f32 %v2216_v34, %v1337_v44  ;;  %v1497_v46 = vpop.f32.mrf.mxu3  ;;  %v1020_v49 = vadd.f32 %v2216_v34, %v1019_v47  ;;  %v1179_v50 = vpop.f32.mrf.mxu1  ;;  %v283_v47 = vld [vmem:[%s2115_s20 + $0x360] sm:$0xff] }
 0x148   : > { %v1498_v48 = vadd.f32 %v2216_v34, %v1497_v46  ;;  %v1180_v51 = vadd.f32 %v2216_v34, %v1179_v50  ;;  %v220_v46 = vld [vmem:[%s2115_s20 + $0x168] sm:$0xff] }
 0x149   : > { %1753 = vst.msk [vmem:[%s2231_s25 + $0x4b0] sm:$0xff] %vm1602_vm2, %v1338_v45  ;;  %v219_v45 = vld [vmem:[%s2115_s20 + $0x160] sm:$0xff]  ;;  %v348_v50 = vld [vmem:[%s2115_s20 + $0x568] sm:$0xff] }
 0x14a   : > { %1817 = vst.msk [vmem:[%s2231_s25 + $0x6b0] sm:$0xff] %vm1602_vm2, %v1498_v48  ;;  %v284_v48 = vld [vmem:[%s2115_s20 + $0x368] sm:$0xff]  ;;  %v453_v54 = vpack.c.bf16 %v220_v46, %v219_v45 }
 0x14b   : > { %1626 = vst.msk [vmem:[%s2231_s25 + $0xb8] sm:$0xff] %vm1602_vm2, %v1020_v49  ;;  %v347_v49 = vld [vmem:[%s2115_s20 + $0x560] sm:$0xff]  ;;  %v485_v58 = vpack.c.bf16 %v284_v48, %v283_v47  ;;  %v416_v45 = vld [vmem:[%s2115_s20 + $0x788] sm:$0xff] }
 0x14c   : > { %1690 = vst.msk [vmem:[%s2231_s25 + $0x2b8] sm:$0xff] %vm1602_vm2, %v1180_v51  ;;  %v411_v51 = vld [vmem:[%s2115_s20 + $0x760] sm:$0xff]  ;;  %v517_v59 = vpack.c.bf16 %v348_v50, %v347_v49 }
 0x14e   : > { %v1339_v60 = vpop.f32.mrf.mxu2  ;;  %v1022_v0 = vpop.f32.mrf.mxu0 }
 0x14f   : > { %v1340_v62 = vadd.f32 %v2216_v34, %v1339_v60  ;;  %v1499_v63 = vpop.f32.mrf.mxu3  ;;  %v1023_v4 = vadd.f32 %v2216_v34, %v1022_v0  ;;  %v1182_v5 = vpop.f32.mrf.mxu1 }
 0x150   : > { %v1500_v3 = vadd.f32 %v2216_v34, %v1499_v63  ;;  %v1183_v7 = vadd.f32 %v2216_v34, %v1182_v5  ;;  %v549_v63 = vpack.c.bf16 %v412_v52, %v411_v51 }
 0x151   : > { %1754 = vst.msk [vmem:[%s2231_s25 + $0x4b8] sm:$0xff] %vm1602_vm2, %v1340_v62  ;;  %1944 = vmatmul.msk.bf16.gmra.mxu0 %vm564_vm1, %v451_v61 }
 0x152   : > { %1818 = vst.msk [vmem:[%s2231_s25 + $0x6b8] sm:$0xff] %vm1602_vm2, %v1500_v3  ;;  %1976 = vmatmul.msk.bf16.gmra.mxu1 %vm564_vm1, %v483_v1 }
 0x153   : > { %1627 = vst.msk [vmem:[%s2231_s25 + $0xc0] sm:$0xff] %vm1602_vm2, %v1023_v4  ;;  %2008 = vmatmul.msk.bf16.gmra.mxu2 %vm564_vm1, %v515_v2 }
 0x154   : > { %1691 = vst.msk [vmem:[%s2231_s25 + $0x2c0] sm:$0xff] %vm1602_vm2, %v1183_v7  ;;  %2040 = vmatmul.msk.bf16.gmra.mxu3 %vm564_vm1, %v547_v6 }
 0x156   : > { %v1342_v8 = vpop.f32.mrf.mxu2  ;;  %v1024_v11 = vpop.f32.mrf.mxu0 }
 0x157   : > { %v1343_v9 = vadd.f32 %v2216_v34, %v1342_v8  ;;  %v1502_v10 = vpop.f32.mrf.mxu3  ;;  %v1025_v13 = vadd.f32 %v2216_v34, %v1024_v11  ;;  %v1184_v14 = vpop.f32.mrf.mxu1  ;;  %v285_v11 = vld [vmem:[%s2115_s20 + $0x370] sm:$0xff] }
 0x158   : > { %v1503_v12 = vadd.f32 %v2216_v34, %v1502_v10  ;;  %v1185_v16 = vadd.f32 %v2683_v15, %v1184_v14  ;;  %v282_v34 = vld [vmem:[%s2115_s20 + $0x358] sm:$0xff] }
 0x159   : > { %1755 = vst.msk [vmem:[%s2231_s25 + $0x4c0] sm:$0xff] %vm1602_vm2, %v1343_v9  ;;  %v484_v29 = vpack.c.bf16 %v282_v34, %v281_v19  ;;  %v221_v9 = vld [vmem:[%s2115_s20 + $0x170] sm:$0xff]  ;;  %v222_v10 = vld [vmem:[%s2115_s20 + $0x178] sm:$0xff] }
 0x15a   : > { %1819 = vst.msk [vmem:[%s2231_s25 + $0x6c0] sm:$0xff] %vm1602_vm2, %v1503_v12  ;;  %v286_v12 = vld [vmem:[%s2115_s20 + $0x378] sm:$0xff]  ;;  %v454_v19 = vpack.c.bf16 %v222_v10, %v221_v9 }
 0x15b   : > { %1628 = vst.msk [vmem:[%s2231_s25 + $0xc8] sm:$0xff] %vm1602_vm2, %v1025_v13  ;;  %v349_v13 = vld [vmem:[%s2115_s20 + $0x570] sm:$0xff]  ;;  %v350_v14 = vld [vmem:[%s2115_s20 + $0x578] sm:$0xff]  ;;  %v486_v22 = vpack.c.bf16 %v286_v12, %v285_v11 }
 0x15c   : > { %1692 = vst.msk [vmem:[%s2231_s25 + $0x2c8] sm:$0xff] %vm1602_vm2, %v1185_v16  ;;  %v413_v16 = vld [vmem:[%s2115_s20 + $0x770] sm:$0xff]  ;;  %v518_v23 = vpack.c.bf16 %v350_v14, %v349_v13  ;;  %v418_v9 = vld [vmem:[%s2115_s20 + $0x798] sm:$0xff] }
 0x15e   : > { %v1344_v24 = vpop.f32.mrf.mxu2  ;;  %v1027_v28 = vpop.f32.mrf.mxu0 }
 0x15f   : > { %v1345_v26 = vadd.f32 %v2683_v15, %v1344_v24  ;;  %v1504_v27 = vpop.f32.mrf.mxu3  ;;  %v1028_v32 = vadd.f32 %v2683_v15, %v1027_v28  ;;  %v1187_v33 = vpop.f32.mrf.mxu1 }
 0x160   : > { %v1505_v31 = vadd.f32 %v2683_v15, %v1504_v27  ;;  %v1188_v36 = vadd.f32 %v2683_v15, %v1187_v33  ;;  %v550_v27 = vpack.c.bf16 %v414_v17, %v413_v16 }
 0x161   : > { %1756 = vst.msk [vmem:[%s2231_s25 + $0x4c8] sm:$0xff] %vm1602_vm2, %v1345_v26  ;;  %1945 = vmatmul.msk.bf16.gmra.mxu0 %vm564_vm1, %v452_v25 }
 0x162   : > { %1820 = vst.msk [vmem:[%s2231_s25 + $0x6c8] sm:$0xff] %vm1602_vm2, %v1505_v31  ;;  %1977 = vmatmul.msk.bf16.gmra.mxu1 %vm564_vm1, %v484_v29 }
 0x163   : > { %1629 = vst.msk [vmem:[%s2231_s25 + $0xd0] sm:$0xff] %vm1602_vm2, %v1028_v32  ;;  %2009 = vmatmul.msk.bf16.gmra.mxu2 %vm564_vm1, %v516_v30 }
 0x164   : > { %1693 = vst.msk [vmem:[%s2231_s25 + $0x2d0] sm:$0xff] %vm1602_vm2, %v1188_v36  ;;  %2041 = vmatmul.msk.bf16.gmra.mxu3 %vm564_vm1, %v548_v35 }
 0x166   : > { %v1347_v37 = vpop.f32.mrf.mxu2  ;;  %v1029_v40 = vpop.f32.mrf.mxu0 }
 0x167   : > { %v1348_v38 = vadd.f32 %v2683_v15, %v1347_v37  ;;  %v1507_v39 = vpop.f32.mrf.mxu3  ;;  %v1030_v42 = vadd.f32 %v2683_v15, %v1029_v40  ;;  %v1189_v43 = vpop.f32.mrf.mxu1  ;;  %v287_v40 = vld [vmem:[%s2115_s20 + $0x380] sm:$0xff] }
 0x168   : > { %v1508_v41 = vadd.f32 %v2683_v15, %v1507_v39  ;;  %v1190_v44 = vadd.f32 %v2683_v15, %v1189_v43  ;;  %v224_v39 = vld [vmem:[%s2115_s20 + $0x188] sm:$0xff] }
 0x169   : > { %1757 = vst.msk [vmem:[%s2231_s25 + $0x4d0] sm:$0xff] %vm1602_vm2, %v1348_v38  ;;  %v223_v38 = vld [vmem:[%s2115_s20 + $0x180] sm:$0xff]  ;;  %v352_v43 = vld [vmem:[%s2115_s20 + $0x588] sm:$0xff] }
 0x16a   : > { %1821 = vst.msk [vmem:[%s2231_s25 + $0x6d0] sm:$0xff] %vm1602_vm2, %v1508_v41  ;;  %v288_v41 = vld [vmem:[%s2115_s20 + $0x388] sm:$0xff]  ;;  %v455_v47 = vpack.c.bf16 %v224_v39, %v223_v38 }
 0x16b   : > { %1630 = vst.msk [vmem:[%s2231_s25 + $0xd8] sm:$0xff] %vm1602_vm2, %v1030_v42  ;;  %v351_v42 = vld [vmem:[%s2115_s20 + $0x580] sm:$0xff]  ;;  %v487_v51 = vpack.c.bf16 %v288_v41, %v287_v40  ;;  %v420_v38 = vld [vmem:[%s2115_s20 + $0x7a8] sm:$0xff] }
 0x16c   : > { %1694 = vst.msk [vmem:[%s2231_s25 + $0x2d8] sm:$0xff] %vm1602_vm2, %v1190_v44  ;;  %v415_v44 = vld [vmem:[%s2115_s20 + $0x780] sm:$0xff]  ;;  %v519_v52 = vpack.c.bf16 %v352_v43, %v351_v42 }
 0x16e   : > { %v1349_v53 = vpop.f32.mrf.mxu2  ;;  %v1032_v57 = vpop.f32.mrf.mxu0 }
 0x16f   : > { %v1350_v55 = vadd.f32 %v2683_v15, %v1349_v53  ;;  %v1509_v56 = vpop.f32.mrf.mxu3  ;;  %v1033_v61 = vadd.f32 %v2683_v15, %v1032_v57  ;;  %v1192_v62 = vpop.f32.mrf.mxu1 }
 0x170   : > { %v1510_v60 = vadd.f32 %v2683_v15, %v1509_v56  ;;  %v1193_v0 = vadd.f32 %v2683_v15, %v1192_v62  ;;  %v551_v56 = vpack.c.bf16 %v416_v45, %v415_v44 }
 0x171   : > { %1758 = vst.msk [vmem:[%s2231_s25 + $0x4d8] sm:$0xff] %vm1602_vm2, %v1350_v55  ;;  %1946 = vmatmul.msk.bf16.gmra.mxu0 %vm564_vm1, %v453_v54 }
 0x172   : > { %1822 = vst.msk [vmem:[%s2231_s25 + $0x6d8] sm:$0xff] %vm1602_vm2, %v1510_v60  ;;  %1978 = vmatmul.msk.bf16.gmra.mxu1 %vm564_vm1, %v485_v58 }
 0x173   : > { %1631 = vst.msk [vmem:[%s2231_s25 + $0xe0] sm:$0xff] %vm1602_vm2, %v1033_v61  ;;  %2010 = vmatmul.msk.bf16.gmra.mxu2 %vm564_vm1, %v517_v59 }
 0x174   : > { %1695 = vst.msk [vmem:[%s2231_s25 + $0x2e0] sm:$0xff] %vm1602_vm2, %v1193_v0  ;;  %2042 = vmatmul.msk.bf16.gmra.mxu3 %vm564_vm1, %v549_v63 }
 0x176   : > { %v1352_v1 = vpop.f32.mrf.mxu2  ;;  %v1034_v4 = vpop.f32.mrf.mxu0 }
 0x177   : > { %v1353_v2 = vadd.f32 %v2683_v15, %v1352_v1  ;;  %v1512_v3 = vpop.f32.mrf.mxu3  ;;  %v1035_v6 = vadd.f32 %v2683_v15, %v1034_v4  ;;  %v1194_v7 = vpop.f32.mrf.mxu1  ;;  %v289_v4 = vld [vmem:[%s2115_s20 + $0x390] sm:$0xff] }
 0x178   : > { %v1513_v5 = vadd.f32 %v2683_v15, %v1512_v3  ;;  %v1195_v8 = vadd.f32 %v2683_v15, %v1194_v7  ;;  %v226_v3 = vld [vmem:[%s2115_s20 + $0x198] sm:$0xff] }
 0x179   : > { %1759 = vst.msk [vmem:[%s2231_s25 + $0x4e0] sm:$0xff] %vm1602_vm2, %v1353_v2  ;;  %v225_v2 = vld [vmem:[%s2115_s20 + $0x190] sm:$0xff]  ;;  %v354_v7 = vld [vmem:[%s2115_s20 + $0x598] sm:$0xff] }
 0x17a   : > { %1823 = vst.msk [vmem:[%s2231_s25 + $0x6e0] sm:$0xff] %vm1602_vm2, %v1513_v5  ;;  %v290_v5 = vld [vmem:[%s2115_s20 + $0x398] sm:$0xff]  ;;  %v456_v11 = vpack.c.bf16 %v226_v3, %v225_v2 }
 0x17b   : > { %1632 = vst.msk [vmem:[%s2231_s25 + $0xe8] sm:$0xff] %vm1602_vm2, %v1035_v6  ;;  %v353_v6 = vld [vmem:[%s2115_s20 + $0x590] sm:$0xff]  ;;  %v488_v16 = vpack.c.bf16 %v290_v5, %v289_v4  ;;  %v422_v2 = vld [vmem:[%s2115_s20 + $0x7b8] sm:$0xff] }
 0x17c   : > { %1696 = vst.msk [vmem:[%s2231_s25 + $0x2e8] sm:$0xff] %vm1602_vm2, %v1195_v8  ;;  %v417_v8 = vld [vmem:[%s2115_s20 + $0x790] sm:$0xff]  ;;  %v520_v17 = vpack.c.bf16 %v354_v7, %v353_v6 }
 0x17e   : > { %v1354_v18 = vpop.f32.mrf.mxu2  ;;  %v1037_v21 = vpop.f32.mrf.mxu0 }
 0x17f   : > { %v1355_v34 = vadd.f32 %v2683_v15, %v1354_v18  ;;  %v1514_v20 = vpop.f32.mrf.mxu3  ;;  %v1038_v25 = vadd.f32 %v2683_v15, %v1037_v21  ;;  %v1197_v26 = vpop.f32.mrf.mxu1 }
 0x180   : > { %v1515_v24 = vadd.f32 %v2683_v15, %v1514_v20  ;;  %v1198_v28 = vadd.f32 %v2683_v15, %v1197_v26  ;;  %v552_v20 = vpack.c.bf16 %v418_v9, %v417_v8 }
 0x181   : > { %1760 = vst.msk [vmem:[%s2231_s25 + $0x4e8] sm:$0xff] %vm1602_vm2, %v1355_v34  ;;  %1947 = vmatmul.msk.bf16.gmra.mxu0 %vm564_vm1, %v454_v19 }
 0x182   : > { %1824 = vst.msk [vmem:[%s2231_s25 + $0x6e8] sm:$0xff] %vm1602_vm2, %v1515_v24  ;;  %1979 = vmatmul.msk.bf16.gmra.mxu1 %vm564_vm1, %v486_v22 }
 0x183   : > { %1633 = vst.msk [vmem:[%s2231_s25 + $0xf0] sm:$0xff] %vm1602_vm2, %v1038_v25  ;;  %2011 = vmatmul.msk.bf16.gmra.mxu2 %vm564_vm1, %v518_v23 }
 0x184   : > { %1697 = vst.msk [vmem:[%s2231_s25 + $0x2f0] sm:$0xff] %vm1602_vm2, %v1198_v28  ;;  %2043 = vmatmul.msk.bf16.gmra.mxu3 %vm564_vm1, %v550_v27 }
 0x186   : > { %v1357_v29 = vpop.f32.mrf.mxu2  ;;  %v1039_v32 = vpop.f32.mrf.mxu0 }
 0x187   : > { %v1358_v30 = vadd.f32 %v2683_v15, %v1357_v29  ;;  %v1517_v31 = vpop.f32.mrf.mxu3  ;;  %v1040_v35 = vadd.f32 %v2683_v15, %v1039_v32  ;;  %v1199_v36 = vpop.f32.mrf.mxu1  ;;  %v291_v32 = vld [vmem:[%s2115_s20 + $0x3a0] sm:$0xff] }
 0x188   : > { %v1518_v33 = vadd.f32 %v2683_v15, %v1517_v31  ;;  %v1200_v37 = vadd.f32 %v2683_v15, %v1199_v36  ;;  %v228_v31 = vld [vmem:[%s2115_s20 + $0x1a8] sm:$0xff] }
 0x189   : > { %1761 = vst.msk [vmem:[%s2231_s25 + $0x4f0] sm:$0xff] %vm1602_vm2, %v1358_v30  ;;  %v227_v30 = vld [vmem:[%s2115_s20 + $0x1a0] sm:$0xff]  ;;  %v356_v36 = vld [vmem:[%s2115_s20 + $0x5a8] sm:$0xff] }
 0x18a   : > { %1825 = vst.msk [vmem:[%s2231_s25 + $0x6f0] sm:$0xff] %vm1602_vm2, %v1518_v33  ;;  %v292_v33 = vld [vmem:[%s2115_s20 + $0x3a8] sm:$0xff]  ;;  %v457_v40 = vpack.c.bf16 %v228_v31, %v227_v30 }
 0x18b   : > { %1634 = vst.msk [vmem:[%s2231_s25 + $0xf8] sm:$0xff] %vm1602_vm2, %v1040_v35  ;;  %v355_v35 = vld [vmem:[%s2115_s20 + $0x5a0] sm:$0xff]  ;;  %v489_v44 = vpack.c.bf16 %v292_v33, %v291_v32  ;;  %v424_v30 = vld [vmem:[%s2115_s20 + $0x7c8] sm:$0xff] }
 0x18c   : > { %1698 = vst.msk [vmem:[%s2231_s25 + $0x2f8] sm:$0xff] %vm1602_vm2, %v1200_v37  ;;  %v419_v37 = vld [vmem:[%s2115_s20 + $0x7a0] sm:$0xff]  ;;  %v521_v45 = vpack.c.bf16 %v356_v36, %v355_v35 }
 0x18e   : > { %v1359_v46 = vpop.f32.mrf.mxu2  ;;  %v1042_v50 = vpop.f32.mrf.mxu0 }
 0x18f   : > { %v1360_v48 = vadd.f32 %v2683_v15, %v1359_v46  ;;  %v1519_v49 = vpop.f32.mrf.mxu3  ;;  %v1043_v54 = vadd.f32 %v2683_v15, %v1042_v50  ;;  %v1202_v55 = vpop.f32.mrf.mxu1 }
 0x190   : > { %v1520_v53 = vadd.f32 %v2683_v15, %v1519_v49  ;;  %v1203_v57 = vadd.f32 %v2683_v15, %v1202_v55  ;;  %v553_v49 = vpack.c.bf16 %v420_v38, %v419_v37 }
 0x191   : > { %1762 = vst.msk [vmem:[%s2231_s25 + $0x4f8] sm:$0xff] %vm1602_vm2, %v1360_v48  ;;  %1948 = vmatmul.msk.bf16.gmra.mxu0 %vm564_vm1, %v455_v47 }
 0x192   : > { %1826 = vst.msk [vmem:[%s2231_s25 + $0x6f8] sm:$0xff] %vm1602_vm2, %v1520_v53  ;;  %1980 = vmatmul.msk.bf16.gmra.mxu1 %vm564_vm1, %v487_v51 }
 0x193   : > { %1635 = vst.msk [vmem:[%s2231_s25 + $0x100] sm:$0xff] %vm1602_vm2, %v1043_v54  ;;  %2012 = vmatmul.msk.bf16.gmra.mxu2 %vm564_vm1, %v519_v52 }
 0x194   : > { %1699 = vst.msk [vmem:[%s2231_s25 + $0x300] sm:$0xff] %vm1602_vm2, %v1203_v57  ;;  %2044 = vmatmul.msk.bf16.gmra.mxu3 %vm564_vm1, %v551_v56 }
 0x196   : > { %v1362_v58 = vpop.f32.mrf.mxu2  ;;  %v1044_v61 = vpop.f32.mrf.mxu0 }
 0x197   : > { %v1363_v59 = vadd.f32 %v2683_v15, %v1362_v58  ;;  %v1522_v60 = vpop.f32.mrf.mxu3  ;;  %v1045_v63 = vadd.f32 %v2683_v15, %v1044_v61  ;;  %v1204_v0 = vpop.f32.mrf.mxu1  ;;  %v293_v61 = vld [vmem:[%s2115_s20 + $0x3b0] sm:$0xff] }
 0x198   : > { %v1523_v62 = vadd.f32 %v2683_v15, %v1522_v60  ;;  %v1205_v1 = vadd.f32 %v2683_v15, %v1204_v0  ;;  %v230_v60 = vld [vmem:[%s2115_s20 + $0x1b8] sm:$0xff] }
 0x199   : > { %1763 = vst.msk [vmem:[%s2231_s25 + $0x500] sm:$0xff] %vm1602_vm2, %v1363_v59  ;;  %v229_v59 = vld [vmem:[%s2115_s20 + $0x1b0] sm:$0xff]  ;;  %v358_v0 = vld [vmem:[%s2115_s20 + $0x5b8] sm:$0xff] }
 0x19a   : > { %1827 = vst.msk [vmem:[%s2231_s25 + $0x700] sm:$0xff] %vm1602_vm2, %v1523_v62  ;;  %v294_v62 = vld [vmem:[%s2115_s20 + $0x3b8] sm:$0xff]  ;;  %v458_v4 = vpack.c.bf16 %v230_v60, %v229_v59 }
 0x19b   : > { %1636 = vst.msk [vmem:[%s2231_s25 + $0x108] sm:$0xff] %vm1602_vm2, %v1045_v63  ;;  %v357_v63 = vld [vmem:[%s2115_s20 + $0x5b0] sm:$0xff]  ;;  %v490_v8 = vpack.c.bf16 %v294_v62, %v293_v61  ;;  %v426_v59 = vld [vmem:[%s2115_s20 + $0x7d8] sm:$0xff] }
 0x19c   : > { %1700 = vst.msk [vmem:[%s2231_s25 + $0x308] sm:$0xff] %vm1602_vm2, %v1205_v1  ;;  %v421_v1 = vld [vmem:[%s2115_s20 + $0x7b0] sm:$0xff]  ;;  %v522_v9 = vpack.c.bf16 %v358_v0, %v357_v63 }
 0x19e   : > { %v1364_v10 = vpop.f32.mrf.mxu2  ;;  %v1047_v14 = vpop.f32.mrf.mxu0 }
 0x19f   : > { %v1365_v12 = vadd.f32 %v2683_v15, %v1364_v10  ;;  %v1524_v13 = vpop.f32.mrf.mxu3  ;;  %v1048_v19 = vadd.f32 %v2683_v15, %v1047_v14  ;;  %v1207_v34 = vpop.f32.mrf.mxu1 }
 0x1a0   : > { %v1525_v18 = vadd.f32 %v2683_v15, %v1524_v13  ;;  %v1208_v21 = vadd.f32 %v2683_v15, %v1207_v34  ;;  %v554_v13 = vpack.c.bf16 %v422_v2, %v421_v1 }
 0x1a1   : > { %1764 = vst.msk [vmem:[%s2231_s25 + $0x508] sm:$0xff] %vm1602_vm2, %v1365_v12  ;;  %1949 = vmatmul.msk.bf16.gmra.mxu0 %vm564_vm1, %v456_v11 }
 0x1a2   : > { %1828 = vst.msk [vmem:[%s2231_s25 + $0x708] sm:$0xff] %vm1602_vm2, %v1525_v18  ;;  %1981 = vmatmul.msk.bf16.gmra.mxu1 %vm564_vm1, %v488_v16 }
 0x1a3   : > { %1637 = vst.msk [vmem:[%s2231_s25 + $0x110] sm:$0xff] %vm1602_vm2, %v1048_v19  ;;  %2013 = vmatmul.msk.bf16.gmra.mxu2 %vm564_vm1, %v520_v17 }
 0x1a4   : > { %1701 = vst.msk [vmem:[%s2231_s25 + $0x310] sm:$0xff] %vm1602_vm2, %v1208_v21  ;;  %2045 = vmatmul.msk.bf16.gmra.mxu3 %vm564_vm1, %v552_v20 }
 0x1a6   : > { %v1367_v22 = vpop.f32.mrf.mxu2  ;;  %v1049_v25 = vpop.f32.mrf.mxu0 }
 0x1a7   : > { %v1368_v23 = vadd.f32 %v2683_v15, %v1367_v22  ;;  %v1527_v24 = vpop.f32.mrf.mxu3  ;;  %v1050_v27 = vadd.f32 %v2683_v15, %v1049_v25  ;;  %v1209_v28 = vpop.f32.mrf.mxu1  ;;  %v295_v25 = vld [vmem:[%s2115_s20 + $0x3c0] sm:$0xff] }
 0x1a8   : > { %v1528_v26 = vadd.f32 %v2683_v15, %v1527_v24  ;;  %v1210_v29 = vadd.f32 %v2683_v15, %v1209_v28  ;;  %v232_v24 = vld [vmem:[%s2115_s20 + $0x1c8] sm:$0xff] }
 0x1a9   : > { %1765 = vst.msk [vmem:[%s2231_s25 + $0x510] sm:$0xff] %vm1602_vm2, %v1368_v23  ;;  %v231_v23 = vld [vmem:[%s2115_s20 + $0x1c0] sm:$0xff]  ;;  %v360_v28 = vld [vmem:[%s2115_s20 + $0x5c8] sm:$0xff] }
 0x1aa   : > { %1829 = vst.msk [vmem:[%s2231_s25 + $0x710] sm:$0xff] %vm1602_vm2, %v1528_v26  ;;  %v296_v26 = vld [vmem:[%s2115_s20 + $0x3c8] sm:$0xff]  ;;  %v459_v32 = vpack.c.bf16 %v232_v24, %v231_v23 }
 0x1ab   : > { %1638 = vst.msk [vmem:[%s2231_s25 + $0x118] sm:$0xff] %vm1602_vm2, %v1050_v27  ;;  %v359_v27 = vld [vmem:[%s2115_s20 + $0x5c0] sm:$0xff]  ;;  %v491_v37 = vpack.c.bf16 %v296_v26, %v295_v25  ;;  %v428_v23 = vld [vmem:[%s2115_s20 + $0x7e8] sm:$0xff] }
 0x1ac   : > { %1702 = vst.msk [vmem:[%s2231_s25 + $0x318] sm:$0xff] %vm1602_vm2, %v1210_v29  ;;  %v423_v29 = vld [vmem:[%s2115_s20 + $0x7c0] sm:$0xff]  ;;  %v523_v38 = vpack.c.bf16 %v360_v28, %v359_v27 }
 0x1ae   : > { %v1369_v39 = vpop.f32.mrf.mxu2  ;;  %v1052_v43 = vpop.f32.mrf.mxu0 }
 0x1af   : > { %v1370_v41 = vadd.f32 %v2683_v15, %v1369_v39  ;;  %v1529_v42 = vpop.f32.mrf.mxu3  ;;  %v1053_v47 = vadd.f32 %v2683_v15, %v1052_v43  ;;  %v1212_v48 = vpop.f32.mrf.mxu1 }
 0x1b0   : > { %v1530_v46 = vadd.f32 %v2683_v15, %v1529_v42  ;;  %v1213_v50 = vadd.f32 %v2683_v15, %v1212_v48  ;;  %v555_v42 = vpack.c.bf16 %v424_v30, %v423_v29 }
 0x1b1   : > { %1766 = vst.msk [vmem:[%s2231_s25 + $0x518] sm:$0xff] %vm1602_vm2, %v1370_v41  ;;  %1950 = vmatmul.msk.bf16.gmra.mxu0 %vm564_vm1, %v457_v40 }
 0x1b2   : > { %1830 = vst.msk [vmem:[%s2231_s25 + $0x718] sm:$0xff] %vm1602_vm2, %v1530_v46  ;;  %1982 = vmatmul.msk.bf16.gmra.mxu1 %vm564_vm1, %v489_v44 }
 0x1b3   : > { %1639 = vst.msk [vmem:[%s2231_s25 + $0x120] sm:$0xff] %vm1602_vm2, %v1053_v47  ;;  %2014 = vmatmul.msk.bf16.gmra.mxu2 %vm564_vm1, %v521_v45 }
 0x1b4   : > { %1703 = vst.msk [vmem:[%s2231_s25 + $0x320] sm:$0xff] %vm1602_vm2, %v1213_v50  ;;  %2046 = vmatmul.msk.bf16.gmra.mxu3 %vm564_vm1, %v553_v49 }
 0x1b6   : > { %v1372_v51 = vpop.f32.mrf.mxu2  ;;  %v1054_v54 = vpop.f32.mrf.mxu0 }
 0x1b7   : > { %v1373_v52 = vadd.f32 %v2683_v15, %v1372_v51  ;;  %v1532_v53 = vpop.f32.mrf.mxu3  ;;  %v1055_v56 = vadd.f32 %v2683_v15, %v1054_v54  ;;  %v1214_v57 = vpop.f32.mrf.mxu1  ;;  %v297_v54 = vld [vmem:[%s2115_s20 + $0x3d0] sm:$0xff] }
 0x1b8   : > { %v1533_v55 = vadd.f32 %v2683_v15, %v1532_v53  ;;  %v1215_v58 = vadd.f32 %v2683_v15, %v1214_v57  ;;  %v234_v53 = vld [vmem:[%s2115_s20 + $0x1d8] sm:$0xff] }
 0x1b9   : > { %1767 = vst.msk [vmem:[%s2231_s25 + $0x520] sm:$0xff] %vm1602_vm2, %v1373_v52  ;;  %v233_v52 = vld [vmem:[%s2115_s20 + $0x1d0] sm:$0xff]  ;;  %v362_v57 = vld [vmem:[%s2115_s20 + $0x5d8] sm:$0xff] }
 0x1ba   : > { %1831 = vst.msk [vmem:[%s2231_s25 + $0x720] sm:$0xff] %vm1602_vm2, %v1533_v55  ;;  %v298_v55 = vld [vmem:[%s2115_s20 + $0x3d8] sm:$0xff]  ;;  %v460_v61 = vpack.c.bf16 %v234_v53, %v233_v52 }
 0x1bb   : > { %1640 = vst.msk [vmem:[%s2231_s25 + $0x128] sm:$0xff] %vm1602_vm2, %v1055_v56  ;;  %v361_v56 = vld [vmem:[%s2115_s20 + $0x5d0] sm:$0xff]  ;;  %v492_v1 = vpack.c.bf16 %v298_v55, %v297_v54  ;;  %v430_v52 = vld [vmem:[%s2115_s20 + $0x7f8] sm:$0xff] }
 0x1bc   : > { %1704 = vst.msk [vmem:[%s2231_s25 + $0x328] sm:$0xff] %vm1602_vm2, %v1215_v58  ;;  %v425_v58 = vld [vmem:[%s2115_s20 + $0x7d0] sm:$0xff]  ;;  %v524_v2 = vpack.c.bf16 %v362_v57, %v361_v56 }
 0x1be   : > { %v1374_v3 = vpop.f32.mrf.mxu2  ;;  %v1057_v7 = vpop.f32.mrf.mxu0 }
 0x1bf   : > { %v1375_v5 = vadd.f32 %v2683_v15, %v1374_v3  ;;  %v1534_v6 = vpop.f32.mrf.mxu3  ;;  %v1058_v11 = vadd.f32 %v2683_v15, %v1057_v7  ;;  %v1217_v12 = vpop.f32.mrf.mxu1 }
 0x1c0   : > { %v1535_v10 = vadd.f32 %v2683_v15, %v1534_v6  ;;  %v1218_v14 = vadd.f32 %v2683_v15, %v1217_v12  ;;  %v556_v6 = vpack.c.bf16 %v426_v59, %v425_v58 }
 0x1c1   : > { %1768 = vst.msk [vmem:[%s2231_s25 + $0x528] sm:$0xff] %vm1602_vm2, %v1375_v5  ;;  %1951 = vmatmul.msk.bf16.gmra.mxu0 %vm564_vm1, %v458_v4 }
 0x1c2   : > { %1832 = vst.msk [vmem:[%s2231_s25 + $0x728] sm:$0xff] %vm1602_vm2, %v1535_v10  ;;  %1983 = vmatmul.msk.bf16.gmra.mxu1 %vm564_vm1, %v490_v8 }
 0x1c3   : > { %1641 = vst.msk [vmem:[%s2231_s25 + $0x130] sm:$0xff] %vm1602_vm2, %v1058_v11  ;;  %2015 = vmatmul.msk.bf16.gmra.mxu2 %vm564_vm1, %v522_v9 }
 0x1c4   : > { %1705 = vst.msk [vmem:[%s2231_s25 + $0x330] sm:$0xff] %vm1602_vm2, %v1218_v14  ;;  %2047 = vmatmul.msk.bf16.gmra.mxu3 %vm564_vm1, %v554_v13 }
 0x1c6   : > { %v1377_v16 = vpop.f32.mrf.mxu2  ;;  %v1059_v19 = vpop.f32.mrf.mxu0 }
 0x1c7   : > { %v1378_v17 = vadd.f32 %v2683_v15, %v1377_v16  ;;  %v1537_v18 = vpop.f32.mrf.mxu3  ;;  %v1060_v20 = vadd.f32 %v2683_v15, %v1059_v19  ;;  %v1219_v21 = vpop.f32.mrf.mxu1  ;;  %v299_v19 = vld [vmem:[%s2115_s20 + $0x3e0] sm:$0xff] }
 0x1c8   : > { %v1538_v34 = vadd.f32 %v2683_v15, %v1537_v18  ;;  %v1220_v22 = vadd.f32 %v2683_v15, %v1219_v21  ;;  %v236_v18 = vld [vmem:[%s2115_s20 + $0x1e8] sm:$0xff] }
 0x1c9   : > { %1769 = vst.msk [vmem:[%s2231_s25 + $0x530] sm:$0xff] %vm1602_vm2, %v1378_v17  ;;  %v235_v17 = vld [vmem:[%s2115_s20 + $0x1e0] sm:$0xff]  ;;  %v364_v21 = vld [vmem:[%s2115_s20 + $0x5e8] sm:$0xff] }
 0x1ca   : > { %1833 = vst.msk [vmem:[%s2231_s25 + $0x730] sm:$0xff] %vm1602_vm2, %v1538_v34  ;;  %v300_v34 = vld [vmem:[%s2115_s20 + $0x3e8] sm:$0xff]  ;;  %v461_v25 = vpack.c.bf16 %v236_v18, %v235_v17 }
 0x1cb   : > { %1642 = vst.msk [vmem:[%s2231_s25 + $0x138] sm:$0xff] %vm1602_vm2, %v1060_v20  ;;  %v363_v20 = vld [vmem:[%s2115_s20 + $0x5e0] sm:$0xff]  ;;  %v493_v29 = vpack.c.bf16 %v300_v34, %v299_v19 }
 0x1cc   : > { %1706 = vst.msk [vmem:[%s2231_s25 + $0x338] sm:$0xff] %vm1602_vm2, %v1220_v22  ;;  %v427_v22 = vld [vmem:[%s2115_s20 + $0x7e0] sm:$0xff]  ;;  %v525_v30 = vpack.c.bf16 %v364_v21, %v363_v20 }
 0x1ce   : > { %v1379_v31 = vpop.f32.mrf.mxu2  ;;  %v1062_v36 = vpop.f32.mrf.mxu0 }
 0x1cf   : > { %v1380_v33 = vadd.f32 %v2683_v15, %v1379_v31  ;;  %v1539_v35 = vpop.f32.mrf.mxu3  ;;  %v1063_v40 = vadd.f32 %v2683_v15, %v1062_v36  ;;  %v1222_v41 = vpop.f32.mrf.mxu1 }
 0x1d0   : > { %v1540_v39 = vadd.f32 %v2683_v15, %v1539_v35  ;;  %v1223_v43 = vadd.f32 %v2683_v15, %v1222_v41  ;;  %v557_v35 = vpack.c.bf16 %v428_v23, %v427_v22 }
 0x1d1   : > { %1770 = vst.msk [vmem:[%s2231_s25 + $0x538] sm:$0xff] %vm1602_vm2, %v1380_v33  ;;  %1952 = vmatmul.msk.bf16.gmra.mxu0 %vm564_vm1, %v459_v32 }
 0x1d2   : > { %1834 = vst.msk [vmem:[%s2231_s25 + $0x738] sm:$0xff] %vm1602_vm2, %v1540_v39  ;;  %1984 = vmatmul.msk.bf16.gmra.mxu1 %vm564_vm1, %v491_v37 }
 0x1d3   : > { %1643 = vst.msk [vmem:[%s2231_s25 + $0x140] sm:$0xff] %vm1602_vm2, %v1063_v40  ;;  %2016 = vmatmul.msk.bf16.gmra.mxu2 %vm564_vm1, %v523_v38 }
 0x1d4   : > { %1707 = vst.msk [vmem:[%s2231_s25 + $0x340] sm:$0xff] %vm1602_vm2, %v1223_v43  ;;  %2048 = vmatmul.msk.bf16.gmra.mxu3 %vm564_vm1, %v555_v42 }
 0x1d6   : > { %v1382_v44 = vpop.f32.mrf.mxu2  ;;  %v1064_v47 = vpop.f32.mrf.mxu0 }
 0x1d7   : > { %v1383_v45 = vadd.f32 %v2683_v15, %v1382_v44  ;;  %v1542_v46 = vpop.f32.mrf.mxu3  ;;  %v1065_v49 = vadd.f32 %v2683_v15, %v1064_v47  ;;  %v1224_v50 = vpop.f32.mrf.mxu1  ;;  %v301_v47 = vld [vmem:[%s2115_s20 + $0x3f0] sm:$0xff] }
 0x1d8   : > { %v1543_v48 = vadd.f32 %v2683_v15, %v1542_v46  ;;  %v1225_v51 = vadd.f32 %v2683_v15, %v1224_v50  ;;  %v238_v46 = vld [vmem:[%s2115_s20 + $0x1f8] sm:$0xff] }
 0x1d9   : > { %1771 = vst.msk [vmem:[%s2231_s25 + $0x540] sm:$0xff] %vm1602_vm2, %v1383_v45  ;;  %v237_v45 = vld [vmem:[%s2115_s20 + $0x1f0] sm:$0xff]  ;;  %v366_v50 = vld [vmem:[%s2115_s20 + $0x5f8] sm:$0xff] }
 0x1da   : > { %1835 = vst.msk [vmem:[%s2231_s25 + $0x740] sm:$0xff] %vm1602_vm2, %v1543_v48  ;;  %v302_v48 = vld [vmem:[%s2115_s20 + $0x3f8] sm:$0xff]  ;;  %v462_v54 = vpack.c.bf16 %v238_v46, %v237_v45 }
 0x1db   : > { %1644 = vst.msk [vmem:[%s2231_s25 + $0x148] sm:$0xff] %vm1602_vm2, %v1065_v49  ;;  %v365_v49 = vld [vmem:[%s2115_s20 + $0x5f0] sm:$0xff]  ;;  %v494_v58 = vpack.c.bf16 %v302_v48, %v301_v47 }
 0x1dc   : > { %1708 = vst.msk [vmem:[%s2231_s25 + $0x348] sm:$0xff] %vm1602_vm2, %v1225_v51  ;;  %v429_v51 = vld [vmem:[%s2115_s20 + $0x7f0] sm:$0xff]  ;;  %v526_v59 = vpack.c.bf16 %v366_v50, %v365_v49 }
 0x1de   : > { %v1384_v60 = vpop.f32.mrf.mxu2  ;;  %v1067_v0 = vpop.f32.mrf.mxu0 }
 0x1df   : > { %v1385_v62 = vadd.f32 %v2683_v15, %v1384_v60  ;;  %v1544_v63 = vpop.f32.mrf.mxu3  ;;  %v1068_v4 = vadd.f32 %v2683_v15, %v1067_v0  ;;  %v1227_v5 = vpop.f32.mrf.mxu1 }
 0x1e0   : > { %v1545_v3 = vadd.f32 %v2683_v15, %v1544_v63  ;;  %v1228_v7 = vadd.f32 %v2683_v15, %v1227_v5  ;;  %v558_v63 = vpack.c.bf16 %v430_v52, %v429_v51 }
 0x1e1   : > { %1772 = vst.msk [vmem:[%s2231_s25 + $0x548] sm:$0xff] %vm1602_vm2, %v1385_v62  ;;  %1953 = vmatmul.msk.bf16.gmra.mxu0 %vm564_vm1, %v460_v61 }
 0x1e2   : > { %1836 = vst.msk [vmem:[%s2231_s25 + $0x748] sm:$0xff] %vm1602_vm2, %v1545_v3  ;;  %1985 = vmatmul.msk.bf16.gmra.mxu1 %vm564_vm1, %v492_v1 }
 0x1e3   : > { %1645 = vst.msk [vmem:[%s2231_s25 + $0x150] sm:$0xff] %vm1602_vm2, %v1068_v4  ;;  %2017 = vmatmul.msk.bf16.gmra.mxu2 %vm564_vm1, %v524_v2 }
 0x1e4   : > { %1709 = vst.msk [vmem:[%s2231_s25 + $0x350] sm:$0xff] %vm1602_vm2, %v1228_v7  ;;  %2049 = vmatmul.msk.bf16.gmra.mxu3 %vm564_vm1, %v556_v6 }
 0x1e6   : > { %v1387_v8 = vpop.f32.mrf.mxu2  ;;  %v1069_v11 = vpop.f32.mrf.mxu0 }
 0x1e7   : > { %v1388_v9 = vadd.f32 %v2683_v15, %v1387_v8  ;;  %v1547_v10 = vpop.f32.mrf.mxu3  ;;  %v1070_v13 = vadd.f32 %v2683_v15, %v1069_v11  ;;  %v1229_v14 = vpop.f32.mrf.mxu1 }
 0x1e8   : > { %v1548_v12 = vadd.f32 %v2683_v15, %v1547_v10  ;;  %v1230_v16 = vadd.f32 %v2683_v15, %v1229_v14 }
 0x1e9   : > { %1773 = vst.msk [vmem:[%s2231_s25 + $0x550] sm:$0xff] %vm1602_vm2, %v1388_v9 }
 0x1ea   : > { %1837 = vst.msk [vmem:[%s2231_s25 + $0x750] sm:$0xff] %vm1602_vm2, %v1548_v12 }
 0x1eb   : > { %1646 = vst.msk [vmem:[%s2231_s25 + $0x158] sm:$0xff] %vm1602_vm2, %v1070_v13 }
 0x1ec   : > { %1710 = vst.msk [vmem:[%s2231_s25 + $0x358] sm:$0xff] %vm1602_vm2, %v1230_v16 }
 0x1ee   : > { %v1389_v24 = vpop.f32.mrf.mxu2  ;;  %v1072_v28 = vpop.f32.mrf.mxu0 }
 0x1ef   : > { %v1390_v26 = vadd.f32 %v2683_v15, %v1389_v24  ;;  %v1549_v27 = vpop.f32.mrf.mxu3  ;;  %v1073_v32 = vadd.f32 %v2683_v15, %v1072_v28  ;;  %v1232_v33 = vpop.f32.mrf.mxu1 }
 0x1f0   : > { %v1550_v31 = vadd.f32 %v2683_v15, %v1549_v27  ;;  %v1233_v36 = vadd.f32 %v2683_v15, %v1232_v33 }
 0x1f1   : > { %1774 = vst.msk [vmem:[%s2231_s25 + $0x558] sm:$0xff] %vm1602_vm2, %v1390_v26  ;;  %1954 = vmatmul.msk.bf16.gmra.mxu0 %vm564_vm1, %v461_v25 }
 0x1f2   : > { %1838 = vst.msk [vmem:[%s2231_s25 + $0x758] sm:$0xff] %vm1602_vm2, %v1550_v31  ;;  %1986 = vmatmul.msk.bf16.gmra.mxu1 %vm564_vm1, %v493_v29 }
 0x1f3   : > { %1647 = vst.msk [vmem:[%s2231_s25 + $0x160] sm:$0xff] %vm1602_vm2, %v1073_v32  ;;  %2018 = vmatmul.msk.bf16.gmra.mxu2 %vm564_vm1, %v525_v30 }
 0x1f4   : > { %1711 = vst.msk [vmem:[%s2231_s25 + $0x360] sm:$0xff] %vm1602_vm2, %v1233_v36  ;;  %2050 = vmatmul.msk.bf16.gmra.mxu3 %vm564_vm1, %v557_v35 }
 0x1f6   : > { %v1392_v37 = vpop.f32.mrf.mxu2  ;;  %v1074_v40 = vpop.f32.mrf.mxu0 }
 0x1f7   : > { %v1393_v38 = vadd.f32 %v2683_v15, %v1392_v37  ;;  %v1552_v39 = vpop.f32.mrf.mxu3  ;;  %v1075_v42 = vadd.f32 %v2683_v15, %v1074_v40  ;;  %v1234_v43 = vpop.f32.mrf.mxu1 }
 0x1f8   : > { %v1553_v41 = vadd.f32 %v2683_v15, %v1552_v39  ;;  %v1235_v44 = vadd.f32 %v2683_v15, %v1234_v43 }
 0x1f9   : > { %1775 = vst.msk [vmem:[%s2231_s25 + $0x560] sm:$0xff] %vm1602_vm2, %v1393_v38 }
 0x1fa   : > { %1839 = vst.msk [vmem:[%s2231_s25 + $0x760] sm:$0xff] %vm1602_vm2, %v1553_v41 }
 0x1fb   : > { %1648 = vst.msk [vmem:[%s2231_s25 + $0x168] sm:$0xff] %vm1602_vm2, %v1075_v42 }
 0x1fc   : > { %1712 = vst.msk [vmem:[%s2231_s25 + $0x368] sm:$0xff] %vm1602_vm2, %v1235_v44 }
 0x1fe   : > { %v1394_v53 = vpop.f32.mrf.mxu2  ;;  %v1077_v57 = vpop.f32.mrf.mxu0 }
 0x1ff   : > { %v1395_v55 = vadd.f32 %v2683_v15, %v1394_v53  ;;  %v1554_v56 = vpop.f32.mrf.mxu3  ;;  %v1078_v61 = vadd.f32 %v2683_v15, %v1077_v57  ;;  %v1237_v62 = vpop.f32.mrf.mxu1  ;;  %v3156_v57 = vld [vmem:[%s3296_s2] ss:$0 sm:$0xff] }
 0x200   : > { %v1555_v60 = vadd.f32 %v2683_v15, %v1554_v56  ;;  %v1238_v0 = vadd.f32 %v2683_v15, %v1237_v62 }
 0x201   : > { %1776 = vst.msk [vmem:[%s2231_s25 + $0x568] sm:$0xff] %vm1602_vm2, %v1395_v55  ;;  %1955 = vmatmul.msk.bf16.gmra.mxu0 %vm564_vm1, %v462_v54 }
 0x202   : > { %1840 = vst.msk [vmem:[%s2231_s25 + $0x768] sm:$0xff] %vm1602_vm2, %v1555_v60  ;;  %1987 = vmatmul.msk.bf16.gmra.mxu1 %vm564_vm1, %v494_v58 }
 0x203   : > { %1649 = vst.msk [vmem:[%s2231_s25 + $0x170] sm:$0xff] %vm1602_vm2, %v1078_v61  ;;  %2019 = vmatmul.msk.bf16.gmra.mxu2 %vm564_vm1, %v526_v59 }
 0x204   : > { %1713 = vst.msk [vmem:[%s2231_s25 + $0x370] sm:$0xff] %vm1602_vm2, %v1238_v0  ;;  %2051 = vmatmul.msk.bf16.gmra.mxu3 %vm564_vm1, %v558_v63 }
 0x206   : > { %v1397_v1 = vpop.f32.mrf.mxu2  ;;  %v1079_v4 = vpop.f32.mrf.mxu0 }
 0x207   : > { %v1398_v2 = vadd.f32 %v2683_v15, %v1397_v1  ;;  %v1557_v3 = vpop.f32.mrf.mxu3  ;;  %v1080_v6 = vadd.f32 %v2683_v15, %v1079_v4  ;;  %v1239_v7 = vpop.f32.mrf.mxu1 }
 0x208   : > { %v1558_v5 = vadd.f32 %v2683_v15, %v1557_v3  ;;  %v1240_v8 = vadd.f32 %v2683_v15, %v1239_v7 }
 0x209   : > { %1777 = vst.msk [vmem:[%s2231_s25 + $0x570] sm:$0xff] %vm1602_vm2, %v1398_v2 }
 0x20a   : > { %1841 = vst.msk [vmem:[%s2231_s25 + $0x770] sm:$0xff] %vm1602_vm2, %v1558_v5 }
 0x20b   : > { %1650 = vst.msk [vmem:[%s2231_s25 + $0x178] sm:$0xff] %vm1602_vm2, %v1080_v6 }
 0x20c   : > { %1714 = vst.msk [vmem:[%s2231_s25 + $0x378] sm:$0xff] %vm1602_vm2, %v1240_v8 }
 0x20e   : > { %v1399_v9 = vpop.f32.mrf.mxu2  ;;  %v1082_v12 = vpop.f32.mrf.mxu0 }
 0x20f   : > { %v1400_v10 = vadd.f32 %v2683_v15, %v1399_v9  ;;  %v1559_v11 = vpop.f32.mrf.mxu3  ;;  %v1083_v14 = vadd.f32 %v2683_v15, %v1082_v12  ;;  %v1242_v16 = vpop.f32.mrf.mxu1 }
 0x210   : > { %v1560_v13 = vadd.f32 %v2683_v15, %v1559_v11  ;;  %v1243_v17 = vadd.f32 %v2683_v15, %v1242_v16 }
 0x211   : > { %1778 = vst.msk [vmem:[%s2231_s25 + $0x578] sm:$0xff] %vm1602_vm2, %v1400_v10 }
 0x212   : > { %1842 = vst.msk [vmem:[%s2231_s25 + $0x778] sm:$0xff] %vm1602_vm2, %v1560_v13 }
 0x213   : > { %1651 = vst.msk [vmem:[%s2231_s25 + $0x180] sm:$0xff] %vm1602_vm2, %v1083_v14 }
 0x214   : > { %1715 = vst.msk [vmem:[%s2231_s25 + $0x380] sm:$0xff] %vm1602_vm2, %v1243_v17 }
 0x216   : > { %v1402_v18 = vpop.f32.mrf.mxu2  ;;  %v1084_v20 = vpop.f32.mrf.mxu0 }
 0x217   : > { %v1403_v19 = vadd.f32 %v2683_v15, %v1402_v18  ;;  %v1562_v34 = vpop.f32.mrf.mxu3  ;;  %v1085_v22 = vadd.f32 %v2683_v15, %v1084_v20  ;;  %v1244_v23 = vpop.f32.mrf.mxu1 }
 0x218   : > { %v1563_v21 = vadd.f32 %v2683_v15, %v1562_v34  ;;  %v1245_v24 = vadd.f32 %v2683_v15, %v1244_v23 }
 0x219   : > { %1779 = vst.msk [vmem:[%s2231_s25 + $0x580] sm:$0xff] %vm1602_vm2, %v1403_v19 }
 0x21a   : > { %1843 = vst.msk [vmem:[%s2231_s25 + $0x780] sm:$0xff] %vm1602_vm2, %v1563_v21 }
 0x21b   : > { %1652 = vst.msk [vmem:[%s2231_s25 + $0x188] sm:$0xff] %vm1602_vm2, %v1085_v22 }
 0x21c   : > { %1716 = vst.msk [vmem:[%s2231_s25 + $0x388] sm:$0xff] %vm1602_vm2, %v1245_v24 }
 0x21e   : > { %v1404_v25 = vpop.f32.mrf.mxu2  ;;  %v1087_v28 = vpop.f32.mrf.mxu0 }
 0x21f   : > { %v1405_v26 = vadd.f32 %v2683_v15, %v1404_v25  ;;  %v1564_v27 = vpop.f32.mrf.mxu3  ;;  %v1088_v30 = vadd.f32 %v2683_v15, %v1087_v28  ;;  %v1247_v31 = vpop.f32.mrf.mxu1 }
 0x220   : > { %v1565_v29 = vadd.f32 %v2683_v15, %v1564_v27  ;;  %v1248_v32 = vadd.f32 %v2683_v15, %v1247_v31 }
 0x221   : > { %1780 = vst.msk [vmem:[%s2231_s25 + $0x588] sm:$0xff] %vm1602_vm2, %v1405_v26 }
 0x222   : > { %1844 = vst.msk [vmem:[%s2231_s25 + $0x788] sm:$0xff] %vm1602_vm2, %v1565_v29 }
 0x223   : > { %1653 = vst.msk [vmem:[%s2231_s25 + $0x190] sm:$0xff] %vm1602_vm2, %v1088_v30 }
 0x224   : > { %1717 = vst.msk [vmem:[%s2231_s25 + $0x390] sm:$0xff] %vm1602_vm2, %v1248_v32 }
 0x226   : > { %v1407_v33 = vpop.f32.mrf.mxu2  ;;  %v1089_v37 = vpop.f32.mrf.mxu0 }
 0x227   : > { %v1408_v35 = vadd.f32 %v2683_v15, %v1407_v33  ;;  %v1567_v36 = vpop.f32.mrf.mxu3  ;;  %v1090_v39 = vadd.f32 %v2683_v15, %v1089_v37  ;;  %v1249_v40 = vpop.f32.mrf.mxu1 }
 0x228   : > { %v1568_v38 = vadd.f32 %v2683_v15, %v1567_v36  ;;  %v1250_v41 = vadd.f32 %v2683_v15, %v1249_v40 }
 0x229   : > { %1781 = vst.msk [vmem:[%s2231_s25 + $0x590] sm:$0xff] %vm1602_vm2, %v1408_v35 }
 0x22a   : > { %1845 = vst.msk [vmem:[%s2231_s25 + $0x790] sm:$0xff] %vm1602_vm2, %v1568_v38 }
 0x22b   : > { %1654 = vst.msk [vmem:[%s2231_s25 + $0x198] sm:$0xff] %vm1602_vm2, %v1090_v39 }
 0x22c   : > { %1718 = vst.msk [vmem:[%s2231_s25 + $0x398] sm:$0xff] %vm1602_vm2, %v1250_v41 }
 0x22e   : > { %v1409_v42 = vpop.f32.mrf.mxu2  ;;  %v1092_v45 = vpop.f32.mrf.mxu0 }
 0x22f   : > { %v1410_v43 = vadd.f32 %v2683_v15, %v1409_v42  ;;  %v1569_v44 = vpop.f32.mrf.mxu3  ;;  %v1093_v47 = vadd.f32 %v2683_v15, %v1092_v45  ;;  %v1252_v48 = vpop.f32.mrf.mxu1 }
 0x230   : > { %v1570_v46 = vadd.f32 %v2683_v15, %v1569_v44  ;;  %v1253_v49 = vadd.f32 %v2683_v15, %v1252_v48 }
 0x231   : > { %1782 = vst.msk [vmem:[%s2231_s25 + $0x598] sm:$0xff] %vm1602_vm2, %v1410_v43 }
 0x232   : > { %1846 = vst.msk [vmem:[%s2231_s25 + $0x798] sm:$0xff] %vm1602_vm2, %v1570_v46 }
 0x233   : > { %1655 = vst.msk [vmem:[%s2231_s25 + $0x1a0] sm:$0xff] %vm1602_vm2, %v1093_v47 }
 0x234   : > { %1719 = vst.msk [vmem:[%s2231_s25 + $0x3a0] sm:$0xff] %vm1602_vm2, %v1253_v49 }
 0x236   : > { %v1412_v50 = vpop.f32.mrf.mxu2  ;;  %v1094_v53 = vpop.f32.mrf.mxu0 }
 0x237   : > { %v1413_v51 = vadd.f32 %v2683_v15, %v1412_v50  ;;  %v1572_v52 = vpop.f32.mrf.mxu3  ;;  %v1095_v55 = vadd.f32 %v2683_v15, %v1094_v53  ;;  %v1254_v56 = vpop.f32.mrf.mxu1 }
 0x238   : > { %v1573_v54 = vadd.f32 %v2683_v15, %v1572_v52  ;;  %v1255_v58 = vadd.f32 %v3156_v57, %v1254_v56 }
 0x239   : > { %1783 = vst.msk [vmem:[%s2231_s25 + $0x5a0] sm:$0xff] %vm1602_vm2, %v1413_v51 }
 0x23a   : > { %1847 = vst.msk [vmem:[%s2231_s25 + $0x7a0] sm:$0xff] %vm1602_vm2, %v1573_v54 }
 0x23b   : > { %1656 = vst.msk [vmem:[%s2231_s25 + $0x1a8] sm:$0xff] %vm1602_vm2, %v1095_v55 }
 0x23c   : > { %1720 = vst.msk [vmem:[%s2231_s25 + $0x3a8] sm:$0xff] %vm1602_vm2, %v1255_v58 }
 0x23e   : > { %v1414_v15 = vpop.f32.mrf.mxu2  ;;  %v1097_v61 = vpop.f32.mrf.mxu0 }
 0x23f   : > { %v1415_v59 = vadd.f32 %v3156_v57, %v1414_v15  ;;  %v1574_v60 = vpop.f32.mrf.mxu3  ;;  %v1098_v63 = vadd.f32 %v3156_v57, %v1097_v61  ;;  %v1257_v0 = vpop.f32.mrf.mxu1 }
 0x240   : > { %v1575_v62 = vadd.f32 %v3156_v57, %v1574_v60  ;;  %v1258_v1 = vadd.f32 %v3156_v57, %v1257_v0 }
 0x241   : > { %1784 = vst.msk [vmem:[%s2231_s25 + $0x5a8] sm:$0xff] %vm1602_vm2, %v1415_v59 }
 0x242   : > { %1848 = vst.msk [vmem:[%s2231_s25 + $0x7a8] sm:$0xff] %vm1602_vm2, %v1575_v62 }
 0x243   : > { %1657 = vst.msk [vmem:[%s2231_s25 + $0x1b0] sm:$0xff] %vm1602_vm2, %v1098_v63 }
 0x244   : > { %1721 = vst.msk [vmem:[%s2231_s25 + $0x3b0] sm:$0xff] %vm1602_vm2, %v1258_v1 }
 0x246   : > { %v1417_v2 = vpop.f32.mrf.mxu2  ;;  %v1099_v5 = vpop.f32.mrf.mxu0 }
 0x247   : > { %v1418_v3 = vadd.f32 %v3156_v57, %v1417_v2  ;;  %v1577_v4 = vpop.f32.mrf.mxu3  ;;  %v1100_v7 = vadd.f32 %v3156_v57, %v1099_v5  ;;  %v1259_v8 = vpop.f32.mrf.mxu1 }
 0x248   : > { %v1578_v6 = vadd.f32 %v3156_v57, %v1577_v4  ;;  %v1260_v9 = vadd.f32 %v3156_v57, %v1259_v8 }
 0x249   : > { %1785 = vst.msk [vmem:[%s2231_s25 + $0x5b0] sm:$0xff] %vm1602_vm2, %v1418_v3 }
 0x24a   : > { %1849 = vst.msk [vmem:[%s2231_s25 + $0x7b0] sm:$0xff] %vm1602_vm2, %v1578_v6 }
 0x24b   : > { %1658 = vst.msk [vmem:[%s2231_s25 + $0x1b8] sm:$0xff] %vm1602_vm2, %v1100_v7 }
 0x24c   : > { %1722 = vst.msk [vmem:[%s2231_s25 + $0x3b8] sm:$0xff] %vm1602_vm2, %v1260_v9 }
 0x24e   : > { %v1419_v10 = vpop.f32.mrf.mxu2  ;;  %v1102_v13 = vpop.f32.mrf.mxu0 }
 0x24f   : > { %v1420_v11 = vadd.f32 %v3156_v57, %v1419_v10  ;;  %v1579_v12 = vpop.f32.mrf.mxu3  ;;  %v1103_v16 = vadd.f32 %v3156_v57, %v1102_v13  ;;  %v1262_v17 = vpop.f32.mrf.mxu1 }
 0x250   : > { %v1580_v14 = vadd.f32 %v3156_v57, %v1579_v12  ;;  %v1263_v18 = vadd.f32 %v3156_v57, %v1262_v17 }
 0x251   : > { %1786 = vst.msk [vmem:[%s2231_s25 + $0x5b8] sm:$0xff] %vm1602_vm2, %v1420_v11 }
 0x252   : > { %1850 = vst.msk [vmem:[%s2231_s25 + $0x7b8] sm:$0xff] %vm1602_vm2, %v1580_v14 }
 0x253   : > { %1659 = vst.msk [vmem:[%s2231_s25 + $0x1c0] sm:$0xff] %vm1602_vm2, %v1103_v16 }
 0x254   : > { %1723 = vst.msk [vmem:[%s2231_s25 + $0x3c0] sm:$0xff] %vm1602_vm2, %v1263_v18 }
 0x256   : > { %v1422_v19 = vpop.f32.mrf.mxu2  ;;  %v1104_v21 = vpop.f32.mrf.mxu0 }
 0x257   : > { %v1423_v34 = vadd.f32 %v3156_v57, %v1422_v19  ;;  %v1582_v20 = vpop.f32.mrf.mxu3  ;;  %v1105_v23 = vadd.f32 %v3156_v57, %v1104_v21  ;;  %v1264_v24 = vpop.f32.mrf.mxu1 }
 0x258   : > { %v1583_v22 = vadd.f32 %v3156_v57, %v1582_v20  ;;  %v1265_v25 = vadd.f32 %v3156_v57, %v1264_v24 }
 0x259   : > { %1787 = vst.msk [vmem:[%s2231_s25 + $0x5c0] sm:$0xff] %vm1602_vm2, %v1423_v34 }
 0x25a   : > { %1851 = vst.msk [vmem:[%s2231_s25 + $0x7c0] sm:$0xff] %vm1602_vm2, %v1583_v22 }
 0x25b   : > { %1660 = vst.msk [vmem:[%s2231_s25 + $0x1c8] sm:$0xff] %vm1602_vm2, %v1105_v23 }
 0x25c   : > { %1724 = vst.msk [vmem:[%s2231_s25 + $0x3c8] sm:$0xff] %vm1602_vm2, %v1265_v25 }
 0x25e   : > { %v1424_v26 = vpop.f32.mrf.mxu2  ;;  %v1107_v29 = vpop.f32.mrf.mxu0 }
 0x25f   : > { %v1425_v27 = vadd.f32 %v3156_v57, %v1424_v26  ;;  %v1584_v28 = vpop.f32.mrf.mxu3  ;;  %v1108_v31 = vadd.f32 %v3156_v57, %v1107_v29  ;;  %v1267_v32 = vpop.f32.mrf.mxu1 }
 0x260   : > { %v1585_v30 = vadd.f32 %v3156_v57, %v1584_v28  ;;  %v1268_v33 = vadd.f32 %v3156_v57, %v1267_v32 }
 0x261   : > { %1788 = vst.msk [vmem:[%s2231_s25 + $0x5c8] sm:$0xff] %vm1602_vm2, %v1425_v27 }
 0x262   : > { %1852 = vst.msk [vmem:[%s2231_s25 + $0x7c8] sm:$0xff] %vm1602_vm2, %v1585_v30 }
 0x263   : > { %1661 = vst.msk [vmem:[%s2231_s25 + $0x1d0] sm:$0xff] %vm1602_vm2, %v1108_v31 }
 0x264   : > { %1725 = vst.msk [vmem:[%s2231_s25 + $0x3d0] sm:$0xff] %vm1602_vm2, %v1268_v33 }
 0x266   : > { %v1427_v35 = vpop.f32.mrf.mxu2  ;;  %v1109_v38 = vpop.f32.mrf.mxu0 }
 0x267   : > { %v1428_v36 = vadd.f32 %v3156_v57, %v1427_v35  ;;  %v1587_v37 = vpop.f32.mrf.mxu3  ;;  %v1110_v40 = vadd.f32 %v3156_v57, %v1109_v38  ;;  %v1269_v41 = vpop.f32.mrf.mxu1 }
 0x268   : > { %v1588_v39 = vadd.f32 %v3156_v57, %v1587_v37  ;;  %v1270_v42 = vadd.f32 %v3156_v57, %v1269_v41 }
 0x269   : > { %1789 = vst.msk [vmem:[%s2231_s25 + $0x5d0] sm:$0xff] %vm1602_vm2, %v1428_v36 }
 0x26a   : > { %1853 = vst.msk [vmem:[%s2231_s25 + $0x7d0] sm:$0xff] %vm1602_vm2, %v1588_v39 }
 0x26b   : > { %1662 = vst.msk [vmem:[%s2231_s25 + $0x1d8] sm:$0xff] %vm1602_vm2, %v1110_v40 }
 0x26c   : > { %1726 = vst.msk [vmem:[%s2231_s25 + $0x3d8] sm:$0xff] %vm1602_vm2, %v1270_v42 }
 0x26e   : > { %v1429_v43 = vpop.f32.mrf.mxu2  ;;  %v1112_v46 = vpop.f32.mrf.mxu0 }
 0x26f   : > { %v1430_v44 = vadd.f32 %v3156_v57, %v1429_v43  ;;  %v1589_v45 = vpop.f32.mrf.mxu3  ;;  %v1113_v48 = vadd.f32 %v3156_v57, %v1112_v46  ;;  %v1272_v49 = vpop.f32.mrf.mxu1 }
 0x270   : > { %v1590_v47 = vadd.f32 %v3156_v57, %v1589_v45  ;;  %v1273_v50 = vadd.f32 %v3156_v57, %v1272_v49 }
 0x271   : > { %1790 = vst.msk [vmem:[%s2231_s25 + $0x5d8] sm:$0xff] %vm1602_vm2, %v1430_v44 }
 0x272   : > { %1854 = vst.msk [vmem:[%s2231_s25 + $0x7d8] sm:$0xff] %vm1602_vm2, %v1590_v47 }
 0x273   : > { %1663 = vst.msk [vmem:[%s2231_s25 + $0x1e0] sm:$0xff] %vm1602_vm2, %v1113_v48 }
 0x274   : > { %1727 = vst.msk [vmem:[%s2231_s25 + $0x3e0] sm:$0xff] %vm1602_vm2, %v1273_v50 }
 0x276   : > { %v1432_v51 = vpop.f32.mrf.mxu2  ;;  %v1114_v54 = vpop.f32.mrf.mxu0 }
 0x277   : > { %v1433_v52 = vadd.f32 %v3156_v57, %v1432_v51  ;;  %v1592_v53 = vpop.f32.mrf.mxu3  ;;  %v1115_v56 = vadd.f32 %v3156_v57, %v1114_v54  ;;  %v1274_v58 = vpop.f32.mrf.mxu1 }
 0x278   : > { %v1593_v55 = vadd.f32 %v3156_v57, %v1592_v53  ;;  %v1275_v15 = vadd.f32 %v3156_v57, %v1274_v58 }
 0x279   : > { %1791 = vst.msk [vmem:[%s2231_s25 + $0x5e0] sm:$0xff] %vm1602_vm2, %v1433_v52 }
 0x27a   : > { %1855 = vst.msk [vmem:[%s2231_s25 + $0x7e0] sm:$0xff] %vm1602_vm2, %v1593_v55 }
 0x27b   : > { %1664 = vst.msk [vmem:[%s2231_s25 + $0x1e8] sm:$0xff] %vm1602_vm2, %v1115_v56 }
 0x27c   : > { %1728 = vst.msk [vmem:[%s2231_s25 + $0x3e8] sm:$0xff] %vm1602_vm2, %v1275_v15 }
 0x27e   : > { %v1434_v59 = vpop.f32.mrf.mxu2  ;;  %v1117_v62 = vpop.f32.mrf.mxu0 }
 0x27f   : > { %v1435_v60 = vadd.f32 %v3156_v57, %v1434_v59  ;;  %v1594_v61 = vpop.f32.mrf.mxu3  ;;  %v1118_v0 = vadd.f32 %v3156_v57, %v1117_v62  ;;  %v1277_v1 = vpop.f32.mrf.mxu1 }
 0x280   : > { %v1595_v63 = vadd.f32 %v3156_v57, %v1594_v61  ;;  %v1278_v2 = vadd.f32 %v3156_v57, %v1277_v1 }
 0x281   : > { %1792 = vst.msk [vmem:[%s2231_s25 + $0x5e8] sm:$0xff] %vm1602_vm2, %v1435_v60 }
 0x282   : > { %1856 = vst.msk [vmem:[%s2231_s25 + $0x7e8] sm:$0xff] %vm1602_vm2, %v1595_v63 }
 0x283   : > { %1665 = vst.msk [vmem:[%s2231_s25 + $0x1f0] sm:$0xff] %vm1602_vm2, %v1118_v0 }
 0x284   : > { %1729 = vst.msk [vmem:[%s2231_s25 + $0x3f0] sm:$0xff] %vm1602_vm2, %v1278_v2 }
 0x286   : > { %v1437_v3 = vpop.f32.mrf.mxu2  ;;  %v1119_v6 = vpop.f32.mrf.mxu0 }
 0x287   : > { %v1438_v4 = vadd.f32 %v3156_v57, %v1437_v3  ;;  %v1597_v5 = vpop.f32.mrf.mxu3  ;;  %v1120_v8 = vadd.f32 %v3156_v57, %v1119_v6  ;;  %v1279_v9 = vpop.f32.mrf.mxu1 }
 0x288   : > { %v1598_v7 = vadd.f32 %v3156_v57, %v1597_v5  ;;  %v1280_v10 = vadd.f32 %v3156_v57, %v1279_v9 }
 0x289   : > { %1793 = vst.msk [vmem:[%s2231_s25 + $0x5f0] sm:$0xff] %vm1602_vm2, %v1438_v4 }
 0x28a   : > { %1857 = vst.msk [vmem:[%s2231_s25 + $0x7f0] sm:$0xff] %vm1602_vm2, %v1598_v7 }
 0x28b   : > { %1666 = vst.msk [vmem:[%s2231_s25 + $0x1f8] sm:$0xff] %vm1602_vm2, %v1120_v8 }
 0x28c   : > { %1730 = vst.msk [vmem:[%s2231_s25 + $0x3f8] sm:$0xff] %vm1602_vm2, %v1280_v10 }
 0x28e   : > { %v1439_v11 = vpop.f32.mrf.mxu2 }
 0x28f   : > { %v1440_v12 = vadd.f32 %v3156_v57, %v1439_v11  ;;  %v1599_v13 = vpop.f32.mrf.mxu3 }
 0x290   : > { %v1600_v14 = vadd.f32 %v3156_v57, %v1599_v13 }
 0x291   : > { %1794 = vst.msk [vmem:[%s2231_s25 + $0x5f8] sm:$0xff] %vm1602_vm2, %v1440_v12 }
 0x292   : > { %1858 = vst.msk [vmem:[%s2231_s25 + $0x7f8] sm:$0xff] %vm1602_vm2, %v1600_v14 }
 0x293 PF: > { %s13_s12 = sadd.s32 1, %s2074_s12  }
 0x294   : > { %p10_p4 = scmp.ge.s32.totalorder %s13_s12, 6  }
 0x296   :  { %12 = sbr.rel (!%p10_p4) target bundleno = 1 (0x1), region = 62 }

</bundles_post_ra>
